<compile_context>
chip_gen: v7x
topology: tpu7x:2x2x1
jax: 0.10.0
libtpu: 0.0.40
codegen_flags: <defaults>
</compile_context>

<pallas_src>
import functools
import math

import jax
import jax.numpy as jnp
import numpy as np
from jax import lax
from jax.experimental import pallas as pl
from jax.experimental.pallas import tpu as pltpu

_INV_SQRT2 = 1.0 / math.sqrt(2.0)
_GN_EPS = 1e-5


def _erf(x):
    # Abramowitz & Stegun 7.1.26 rational approximation, |error| <= 1.5e-7.
    # (lax.erf has no guaranteed Mosaic lowering; exp lands on the EUP slot.)
    a1, a2, a3, a4, a5 = (0.254829592, -0.284496736, 1.421413741,
                          -1.453152027, 1.061405429)
    p = 0.3275911
    s = jnp.where(x < 0.0, -1.0, 1.0)
    z = jnp.abs(x)
    t = 1.0 / (1.0 + p * z)
    poly = ((((a5 * t + a4) * t + a3) * t + a2) * t + a1) * t
    return s * (1.0 - poly * jnp.exp(-z * z))


def _gelu_exact(x):
    # torch.nn.GELU default = exact erf-based GELU.
    # TODO(synk): switch to tanh-approx GELU (pure EUP) if the accuracy contract allows.
    return 0.5 * x * (1.0 + _erf(x * _INV_SQRT2))


def _group_norm_cols(v, maskc, gamma, beta, inv_n, nseg, nf):
    """GroupNorm(num_groups=1) applied independently to each nf-wide column segment
    (= one sample) of v (C_pad, nseg*nf).  Stats are f32, count only interior columns
    (via maskc) and only real channels (padded channels are exactly zero)."""
    colsum = jnp.sum(v, axis=0, keepdims=True) * maskc          # (1, NT)
    colsq = jnp.sum(v * v, axis=0, keepdims=True) * maskc       # (1, NT)

    def seg_broadcast(row):                                     # per-segment sum -> cols
        parts = []
        for b in range(nseg):
            s = jnp.sum(row[:, b * nf:(b + 1) * nf], axis=1, keepdims=True)  # (1, 1)
            parts.append(jnp.broadcast_to(s, (1, nf)))
        return parts[0] if nseg == 1 else jnp.concatenate(parts, axis=1)

    mean_c = seg_broadcast(colsum) * inv_n                      # (1, NT)
    ex2_c = seg_broadcast(colsq) * inv_n
    var_c = jnp.maximum(ex2_c - mean_c * mean_c, 0.0)           # cancellation guard
    rstd_c = lax.rsqrt(var_c + _GN_EPS)                         # EUP
    return (v - mean_c) * rstd_c * gamma + beta


def _conv_twice_kernel(x_ref, w1_ref, b1_ref, g1_ref, be1_ref,
                       w2_ref, b2_ref, g2_ref, be2_ref, maskc_ref,
                       out_ref, p_ref, h2_ref,
                       *, H, W, nf, n_mid, n_out, residual):
    # x_ref : (C_in_p, NT)  NT = block_b * nf, batch folded on the lane axis
    # w1_ref: (C_mid_p, 9*C_in_p)   w2_ref: (C_out_p, 9*C_mid_p)   (co, dy, dx, ci)
    # b*/g*/be*: (C_p, 1) f32       maskc: (1, NT) interior-pixel mask
    # out_ref: (C_out_p, NT)        p_ref/h2_ref: shared im2col / intermediate scratch
    Wp = W + 2
    NT = x_ref.shape[1]
    nseg = NT // nf
    c_in_p = x_ref.shape[0]
    c_mid_p = w1_ref.shape[0]

    # flat shift of tap (dy, dx) on the row-major (H+2, W+2) padded grid;
    # dy-major / dx-minor order matches the weight flattening.
    offsets = [(dy - 1) * Wp + (dx - 1) for dy in range(3) for dx in range(3)]

    maskc = maskc_ref[...]                                      # (1, NT) f32

    def im2col(src_ref, cp):
        # Tap t, column q <- src[:, q + off_t].  Interior positions never read across a
        # sample segment, so one global shifted slice per tap is correct everywhere that
        # matters; the |off| wrapped columns only feed non-interior outputs and are
        # written with zeros (never stale VMEM) so NaNs cannot leak into the GN stats.
        for t, off in enumerate(offsets):
            r0 = t * cp
            if off >= 0:
                p_ref[r0:r0 + cp, 0:NT - off] = src_ref[:, off:NT].astype(p_ref.dtype)
                if off:
                    p_ref[r0:r0 + cp, NT - off:NT] = jnp.zeros((cp, off), p_ref.dtype)
            else:
                p_ref[r0:r0 + cp, -off:NT] = src_ref[:, 0:NT + off].astype(p_ref.dtype)
                p_ref[r0:r0 + cp, 0:-off] = jnp.zeros((cp, -off), p_ref.dtype)

    # ---- conv1: ONE matmul for all block_b samples -> GroupNorm(1) -> GELU ----
    im2col(x_ref, c_in_p)
    h = jnp.dot(w1_ref[...], p_ref[0:9 * c_in_p, :],
                preferred_element_type=jnp.float32) + b1_ref[...]        # (C_mid_p, NT)
    hn = _group_norm_cols(h, maskc, g1_ref[...], be1_ref[...],
                          1.0 / float(n_mid), nseg, nf)
    # zero every non-interior column: it becomes conv2's zero padding
    h2_ref[...] = (_gelu_exact(hn) * maskc).astype(h2_ref.dtype)

    # ---- conv2: ONE matmul -> GroupNorm(1) ----
    im2col(h2_ref, c_mid_p)
    y = jnp.dot(w2_ref[...], p_ref[0:9 * c_mid_p, :],
                preferred_element_type=jnp.float32) + b2_ref[...]        # (C_out_p, NT)
    yn = _group_norm_cols(y, maskc, g2_ref[...], be2_ref[...],
                          1.0 / float(n_out), nseg, nf)

    if residual:
        yn = _gelu_exact(x_ref[...].astype(jnp.float32) + yn)

    # single sublane-dense (x8) and lane-dense (x128, unmasked) output store;
    # non-interior columns hold finite don't-cares that the wrapper strips.
    out_ref[...] = yn.astype(out_ref.dtype)


def _round_up(n, m):
    return ((n + m - 1) // m) * m


def _auto_block_b(batch, target=8):
    """Largest divisor of `batch` <= target, preferring an even grid length so both of
    v7x's TensorCores get work (v5e/v6e have a single TC and only care about `target`)."""
    divs = [d for d in range(1, batch + 1) if batch % d == 0 and d <= target]
    best = max(divs)
    even = [d for d in divs if (batch // d) % 2 == 0]
    if even and 2 * max(even) >= best:
        best = max(even)
    return best


def conv_twice(x_nchw, params, residual=False, *, block_b=None, mxu_dtype=None):
    """Pallas TPU implementation of ConvTwice.forward.  x_nchw: (B, C_in, H, W)."""
    w1, b1, g1, be1, w2, b2, g2, be2 = params
    B, C_in, H, W = x_nchw.shape
    C_mid = w1.shape[3]
    C_out = w2.shape[3]
    if residual:
        assert C_in == C_out, "residual ConvTwice requires c_in == c_out"
    if block_b is None:
        block_b = _auto_block_b(B)
    assert B % block_b == 0, "block_b must divide the batch size"
    if mxu_dtype is None:
        # f32 keeps tolerances tight; pass jnp.bfloat16 on v6e/v7x for ~2-3x fewer MXU
        # passes and half the im2col scratch bytes (GN math stays f32 either way).
        mxu_dtype = jnp.float32

    Hp, Wp = H + 2, W + 2
    Np = Hp * Wp                              # flattened zero-padded grid
    Nf = _round_up(Np, 128)                   # lane-dense per-sample segment width
    NT = block_b * Nf                         # columns per grid step
    c_in_p = _round_up(C_in, 8)               # sublane-dense channel counts
    c_mid_p = _round_up(C_mid, 8)
    c_out_p = _round_up(C_out, 8)

    # Activations: NCHW -> zero-pad H/W by 1 -> flatten onto the lane axis, zero-pad
    # channels to x8 and lanes to x128, fold batch into lanes: (C_in_p, B*Nf).
    # ONE pad pass in HBM (no halo extension; taps are in-kernel shifted slices).
    xpad = jnp.pad(x_nchw, ((0, 0), (0, 0), (1, 1), (1, 1)))
    xflat = jnp.pad(xpad.reshape(B, C_in, Np),
                    ((0, 0), (0, c_in_p - C_in), (0, Nf - Np)))
    x2d = jnp.transpose(xflat, (1, 0, 2)).reshape(c_in_p, B * Nf)

    # Weights: HWIO (3,3,ci,co) -> zero-pad channels -> (co_p, 9*ci_p) in (dy,dx,ci)
    # column order, matching the kernel's im2col row order.
    def flat_w(w, ci_p, co_p):
        ci, co = w.shape[2], w.shape[3]
        wp = jnp.pad(w, ((0, 0), (0, 0), (0, ci_p - ci), (0, co_p - co)))
        return jnp.transpose(wp, (3, 0, 1, 2)).reshape(co_p, 9 * ci_p).astype(mxu_dtype)

    def col(v, cp):
        return jnp.pad(v.astype(jnp.float32), (0, cp - v.shape[0])).reshape(cp, 1)

    w1f = flat_w(w1, c_in_p, c_mid_p)
    w2f = flat_w(w2, c_mid_p, c_out_p)
    b1c, g1c, be1c = col(b1, c_mid_p), col(g1, c_mid_p), col(be1, c_mid_p)
    b2c, g2c, be2c = col(b2, c_out_p), col(g2, c_out_p), col(be2, c_out_p)

    # Host-precomputed interior mask: 1 on real pixels of each sample segment,
    # 0 on the padded border ring and the lane-pad tail.
    interior = np.zeros((Hp, Wp), np.float32)
    interior[1:H + 1, 1:W + 1] = 1.0
    intf = np.zeros((Nf,), np.float32)
    intf[:Np] = interior.reshape(-1)
    maskc = jnp.asarray(np.tile(intf, block_b)[None, :])          # (1, NT)

    kernel = functools.partial(
        _conv_twice_kernel, H=H, W=W, nf=Nf,
        n_mid=C_mid * H * W, n_out=C_out * H * W, residual=residual)

    def whole(a):
        return pl.BlockSpec(a.shape, lambda i: (0, 0))

    out2d = pl.pallas_call(
        kernel,
        out_shape=jax.ShapeDtypeStruct((c_out_p, B * Nf), x_nchw.dtype),
        grid_spec=pltpu.PrefetchScalarGridSpec(
            num_scalar_prefetch=0,
            grid=(B // block_b,),
            in_specs=[
                pl.BlockSpec((c_in_p, NT), lambda i: (0, i)),
                whole(w1f), whole(b1c), whole(g1c), whole(be1c),
                whole(w2f), whole(b2c), whole(g2c), whole(be2c),
                whole(maskc),
            ],
            out_specs=pl.BlockSpec((c_out_p, NT), lambda i: (0, i)),
            scratch_shapes=[
                # shared im2col scratch (conv1 then conv2 reuse the same buffer)
                pltpu.VMEM((9 * max(c_in_p, c_mid_p), NT), mxu_dtype),
                # GELU(GN(conv1)) intermediate (border columns zeroed)
                pltpu.VMEM((c_mid_p, NT), mxu_dtype),
            ],
        ),
        # TODO(synk): for large H*W (e.g. 128x128 with C_mid>=64) add a second
        # 'arbitrary' grid axis over row bands (2-row halo) with accumulate-then-
        # normalize GroupNorm and set vmem_limit_bytes explicitly (v7x only has
        # 64 MiB physical VMEM).
        compiler_params=pltpu.CompilerParams(
            dimension_semantics=("parallel",)),
    )(x2d, w1f, b1c, g1c, be1c, w2f, b2c, g2c, be2c, maskc)

    # (C_out_p, B*Nf) -> (B, C_out, H, W): drop channel pad, lane pad and the padded
    # border (which contains finite don't-care values).
    out = out2d.reshape(c_out_p, B, Nf)[:C_out, :, :Np]
    out = jnp.transpose(out, (1, 0, 2)).reshape(B, C_out, Hp, Wp)
    return out[:, :, 1:H + 1, 1:W + 1]


def conv_twice_ref(x_nchw, params, residual=False):
    """Pure-JAX reference (matches PyTorch ConvTwice semantics, exact erf GELU)."""
    w1, b1, g1, be1, w2, b2, g2, be2 = params
    x = jnp.transpose(x_nchw, (0, 2, 3, 1))

    def gelu(v):
        return 0.5 * v * (1.0 + lax.erf(v * _INV_SQRT2))

    def conv(v, w, b):
        y = lax.conv_general_dilated(v, w, (1, 1), "SAME",
                                     dimension_numbers=("NHWC", "HWIO", "NHWC"))
        return y + b

    def gn(v, g, be):
        mu = jnp.mean(v, axis=(1, 2, 3), keepdims=True)
        var = jnp.mean((v - mu) ** 2, axis=(1, 2, 3), keepdims=True)
        return (v - mu) / jnp.sqrt(var + _GN_EPS) * g + be

    h = gelu(gn(conv(x, w1, b1), g1, be1))
    y = gn(conv(h, w2, b2), g2, be2)
    if residual:
        y = gelu(x + y)
    return jnp.transpose(y, (0, 3, 1, 2))


def init_params(key, c_in, c_out, c_mid=None):
    """Deterministic synthetic parameters (shapes match nn.Conv2d / nn.GroupNorm)."""
    if not c_mid:
        c_mid = c_out
    ks = jax.random.split(key, 8)
    w1 = 0.1 * jax.random.normal(ks[0], (3, 3, c_in, c_mid), jnp.float32)   # HWIO
    b1 = 0.1 * jax.random.normal(ks[1], (c_mid,), jnp.float32)
    g1 = 1.0 + 0.1 * jax.random.normal(ks[2], (c_mid,), jnp.float32)
    be1 = 0.1 * jax.random.normal(ks[3], (c_mid,), jnp.float32)
    w2 = 0.1 * jax.random.normal(ks[4], (3, 3, c_mid, c_out), jnp.float32)
    b2 = 0.1 * jax.random.normal(ks[5], (c_out,), jnp.float32)
    g2 = 1.0 + 0.1 * jax.random.normal(ks[6], (c_out,), jnp.float32)
    be2 = 0.1 * jax.random.normal(ks[7], (c_out,), jnp.float32)
    return (w1, b1, g1, be1, w2, b2, g2, be2)


if __name__ == "__main__":
    key = jax.random.PRNGKey(0)
    kx, kp1, kp2 = jax.random.split(key, 3)

    x = jax.random.normal(kx, (2, 4, 16, 16), jnp.float32)

    ct = jax.jit(conv_twice, static_argnames=("residual", "block_b", "mxu_dtype"))

    # Case 1: ConvTwice(c_in=4, c_out=8); both samples batched into one grid step
    # (exercises the multi-sample segmented-GroupNorm path), f32 MXU operands.
    params = init_params(kp1, c_in=4, c_out=8)
    out = jax.block_until_ready(ct(x, params, residual=False, block_b=2))
    ref = conv_twice_ref(x, params, residual=False)
    assert out.shape == (2, 8, 16, 16)
    assert jnp.allclose(out, ref, atol=2e-4, rtol=2e-4), \
        float(jnp.max(jnp.abs(out - ref)))

    # Case 2: residual ConvTwice(c_in=4, c_out=4); auto block_b (even grid for v7x).
    params_r = init_params(kp2, c_in=4, c_out=4)
    out_r = jax.block_until_ready(ct(x, params_r, residual=True))
    ref_r = conv_twice_ref(x, params_r, residual=True)
    assert out_r.shape == (2, 4, 16, 16)
    assert jnp.allclose(out_r, ref_r, atol=2e-4, rtol=2e-4), \
        float(jnp.max(jnp.abs(out_r - ref_r)))

    # Case 3: bf16 MXU operands (the v6e/v7x fast path); loose sanity tolerance
    # because the conv operands / intermediates are rounded to bf16.
    out_bf = jax.block_until_ready(
        ct(x, params, residual=False, block_b=2, mxu_dtype=jnp.bfloat16))
    assert out_bf.shape == (2, 8, 16, 16)
    assert jnp.allclose(out_bf, ref, atol=1e-1, rtol=1e-1), \
        float(jnp.max(jnp.abs(out_bf - ref)))

    print("KERNEL_OK")
</pallas_src>

<mosaic_0001>
module attributes {stable_mosaic.version = 11 : i64} {
  func.func @_conv_twice_kernel(%arg0: i32, %arg1: memref<8x768xf32, #tpu.memory_space<vmem>>, %arg2: memref<8x72xf32, #tpu.memory_space<vmem>>, %arg3: memref<8x1xf32, #tpu.memory_space<vmem>>, %arg4: memref<8x1xf32, #tpu.memory_space<vmem>>, %arg5: memref<8x1xf32, #tpu.memory_space<vmem>>, %arg6: memref<8x72xf32, #tpu.memory_space<vmem>>, %arg7: memref<8x1xf32, #tpu.memory_space<vmem>>, %arg8: memref<8x1xf32, #tpu.memory_space<vmem>>, %arg9: memref<8x1xf32, #tpu.memory_space<vmem>>, %arg10: memref<1x768xf32, #tpu.memory_space<vmem>>, %arg11: memref<8x768xf32, #tpu.memory_space<vmem>>, %arg12: memref<72x768xf32, #tpu.memory_space<vmem>>, %arg13: memref<8x768xf32, #tpu.memory_space<vmem>>) attributes {dimension_semantics = [#tpu.dimension_semantics<parallel>], iteration_bounds = array<i64: 1>, scalar_prefetch = 0 : i64, scratch_operands = 2 : i64, tpu.core_type = #tpu.core_type<tc>, window_params = [{transform_indices = @transform_0, window_bounds = array<i64: 8, 768>}, {pipeline_mode = #tpu.pipeline_mode<synchronous>, transform_indices = @transform_1, window_bounds = array<i64: 8, 72>}, {pipeline_mode = #tpu.pipeline_mode<synchronous>, transform_indices = @transform_2, window_bounds = array<i64: 8, 1>}, {pipeline_mode = #tpu.pipeline_mode<synchronous>, transform_indices = @transform_3, window_bounds = array<i64: 8, 1>}, {pipeline_mode = #tpu.pipeline_mode<synchronous>, transform_indices = @transform_4, window_bounds = array<i64: 8, 1>}, {pipeline_mode = #tpu.pipeline_mode<synchronous>, transform_indices = @transform_5, window_bounds = array<i64: 8, 72>}, {pipeline_mode = #tpu.pipeline_mode<synchronous>, transform_indices = @transform_6, window_bounds = array<i64: 8, 1>}, {pipeline_mode = #tpu.pipeline_mode<synchronous>, transform_indices = @transform_7, window_bounds = array<i64: 8, 1>}, {pipeline_mode = #tpu.pipeline_mode<synchronous>, transform_indices = @transform_8, window_bounds = array<i64: 8, 1>}, {pipeline_mode = #tpu.pipeline_mode<synchronous>, transform_indices = @transform_9, window_bounds = array<i64: 1, 768>}, {transform_indices = @transform_10, window_bounds = array<i64: 8, 768>}]} {
    %c0 = arith.constant 0 : index
    %c0_0 = arith.constant 0 : index
    %0 = vector.load %arg10[%c0, %c0_0] : memref<1x768xf32, #tpu.memory_space<vmem>>, vector<1x768xf32>
    %c0_1 = arith.constant 0 : index
    %c0_2 = arith.constant 0 : index
    %1 = vector.load %arg1[%c0_1, %c0_2] : memref<8x768xf32, #tpu.memory_space<vmem>>, vector<8x749xf32>
    %c0_3 = arith.constant 0 : index
    %c19 = arith.constant 19 : index
    %2 = vector.load %arg12[%c0_3, %c19] : memref<72x768xf32, #tpu.memory_space<vmem>>, vector<8x749xf32>
    tpu.vector_store %arg12[%c0_3, %c19], %1 {strides = array<i32>} : memref<72x768xf32, #tpu.memory_space<vmem>>, vector<8x749xf32>,
    %cst = arith.constant 0.000000e+00 : f32
    %3 = vector.broadcast %cst : f32 to vector<8x19xf32>
    %c0_4 = arith.constant 0 : index
    %c0_5 = arith.constant 0 : index
    %4 = vector.load %arg12[%c0_4, %c0_5] : memref<72x768xf32, #tpu.memory_space<vmem>>, vector<8x19xf32>
    tpu.vector_store %arg12[%c0_4, %c0_5], %3 {strides = array<i32>} : memref<72x768xf32, #tpu.memory_space<vmem>>, vector<8x19xf32>,
    %c0_6 = arith.constant 0 : index
    %c0_7 = arith.constant 0 : index
    %5 = vector.load %arg1[%c0_6, %c0_7] : memref<8x768xf32, #tpu.memory_space<vmem>>, vector<8x750xf32>
    %c8 = arith.constant 8 : index
    %c18 = arith.constant 18 : index
    %6 = vector.load %arg12[%c8, %c18] : memref<72x768xf32, #tpu.memory_space<vmem>>, vector<8x750xf32>
    tpu.vector_store %arg12[%c8, %c18], %5 {strides = array<i32>} : memref<72x768xf32, #tpu.memory_space<vmem>>, vector<8x750xf32>,
    %cst_8 = arith.constant 0.000000e+00 : f32
    %7 = vector.broadcast %cst_8 : f32 to vector<8x18xf32>
    %c8_9 = arith.constant 8 : index
    %c0_10 = arith.constant 0 : index
    %8 = vector.load %arg12[%c8_9, %c0_10] : memref<72x768xf32, #tpu.memory_space<vmem>>, vector<8x18xf32>
    tpu.vector_store %arg12[%c8_9, %c0_10], %7 {strides = array<i32>} : memref<72x768xf32, #tpu.memory_space<vmem>>, vector<8x18xf32>,
    %c0_11 = arith.constant 0 : index
    %c0_12 = arith.constant 0 : index
    %9 = vector.load %arg1[%c0_11, %c0_12] : memref<8x768xf32, #tpu.memory_space<vmem>>, vector<8x751xf32>
    %c16 = arith.constant 16 : index
    %c17 = arith.constant 17 : index
    %10 = vector.load %arg12[%c16, %c17] : memref<72x768xf32, #tpu.memory_space<vmem>>, vector<8x751xf32>
    tpu.vector_store %arg12[%c16, %c17], %9 {strides = array<i32>} : memref<72x768xf32, #tpu.memory_space<vmem>>, vector<8x751xf32>,
    %cst_13 = arith.constant 0.000000e+00 : f32
    %11 = vector.broadcast %cst_13 : f32 to vector<8x17xf32>
    %c16_14 = arith.constant 16 : index
    %c0_15 = arith.constant 0 : index
    %12 = vector.load %arg12[%c16_14, %c0_15] : memref<72x768xf32, #tpu.memory_space<vmem>>, vector<8x17xf32>
    tpu.vector_store %arg12[%c16_14, %c0_15], %11 {strides = array<i32>} : memref<72x768xf32, #tpu.memory_space<vmem>>, vector<8x17xf32>,
    %c0_16 = arith.constant 0 : index
    %c0_17 = arith.constant 0 : index
    %13 = vector.load %arg1[%c0_16, %c0_17] : memref<8x768xf32, #tpu.memory_space<vmem>>, vector<8x767xf32>
    %c24 = arith.constant 24 : index
    %c1 = arith.constant 1 : index
    %14 = vector.load %arg12[%c24, %c1] : memref<72x768xf32, #tpu.memory_space<vmem>>, vector<8x767xf32>
    tpu.vector_store %arg12[%c24, %c1], %13 {strides = array<i32>} : memref<72x768xf32, #tpu.memory_space<vmem>>, vector<8x767xf32>,
    %cst_18 = arith.constant 0.000000e+00 : f32
    %15 = vector.broadcast %cst_18 : f32 to vector<8x1xf32>
    %c24_19 = arith.constant 24 : index
    %c0_20 = arith.constant 0 : index
    %16 = vector.load %arg12[%c24_19, %c0_20] : memref<72x768xf32, #tpu.memory_space<vmem>>, vector<8x1xf32>
    tpu.vector_store %arg12[%c24_19, %c0_20], %15 {strides = array<i32>} : memref<72x768xf32, #tpu.memory_space<vmem>>, vector<8x1xf32>,
    %c0_21 = arith.constant 0 : index
    %c0_22 = arith.constant 0 : index
    %17 = vector.load %arg1[%c0_21, %c0_22] : memref<8x768xf32, #tpu.memory_space<vmem>>, vector<8x768xf32>
    %c32 = arith.constant 32 : index
    %c0_23 = arith.constant 0 : index
    %18 = vector.load %arg12[%c32, %c0_23] : memref<72x768xf32, #tpu.memory_space<vmem>>, vector<8x768xf32>
    tpu.vector_store %arg12[%c32, %c0_23], %17 {strides = array<i32>} : memref<72x768xf32, #tpu.memory_space<vmem>>, vector<8x768xf32>,
    %c0_24 = arith.constant 0 : index
    %c1_25 = arith.constant 1 : index
    %19 = vector.load %arg1[%c0_24, %c1_25] : memref<8x768xf32, #tpu.memory_space<vmem>>, vector<8x767xf32>
    %c40 = arith.constant 40 : index
    %c0_26 = arith.constant 0 : index
    %20 = vector.load %arg12[%c40, %c0_26] : memref<72x768xf32, #tpu.memory_space<vmem>>, vector<8x767xf32>
    tpu.vector_store %arg12[%c40, %c0_26], %19 {strides = array<i32>} : memref<72x768xf32, #tpu.memory_space<vmem>>, vector<8x767xf32>,
    %cst_27 = arith.constant 0.000000e+00 : f32
    %21 = vector.broadcast %cst_27 : f32 to vector<8x1xf32>
    %c40_28 = arith.constant 40 : index
    %c767 = arith.constant 767 : index
    %22 = vector.load %arg12[%c40_28, %c767] : memref<72x768xf32, #tpu.memory_space<vmem>>, vector<8x1xf32>
    tpu.vector_store %arg12[%c40_28, %c767], %21 {strides = array<i32>} : memref<72x768xf32, #tpu.memory_space<vmem>>, vector<8x1xf32>,
    %c0_29 = arith.constant 0 : index
    %c17_30 = arith.constant 17 : index
    %23 = vector.load %arg1[%c0_29, %c17_30] : memref<8x768xf32, #tpu.memory_space<vmem>>, vector<8x751xf32>
    %c48 = arith.constant 48 : index
    %c0_31 = arith.constant 0 : index
    %24 = vector.load %arg12[%c48, %c0_31] : memref<72x768xf32, #tpu.memory_space<vmem>>, vector<8x751xf32>
    tpu.vector_store %arg12[%c48, %c0_31], %23 {strides = array<i32>} : memref<72x768xf32, #tpu.memory_space<vmem>>, vector<8x751xf32>,
    %cst_32 = arith.constant 0.000000e+00 : f32
    %25 = vector.broadcast %cst_32 : f32 to vector<8x17xf32>
    %c48_33 = arith.constant 48 : index
    %c751 = arith.constant 751 : index
    %26 = vector.load %arg12[%c48_33, %c751] : memref<72x768xf32, #tpu.memory_space<vmem>>, vector<8x17xf32>
    tpu.vector_store %arg12[%c48_33, %c751], %25 {strides = array<i32>} : memref<72x768xf32, #tpu.memory_space<vmem>>, vector<8x17xf32>,
    %c0_34 = arith.constant 0 : index
    %c18_35 = arith.constant 18 : index
    %27 = vector.load %arg1[%c0_34, %c18_35] : memref<8x768xf32, #tpu.memory_space<vmem>>, vector<8x750xf32>
    %c56 = arith.constant 56 : index
    %c0_36 = arith.constant 0 : index
    %28 = vector.load %arg12[%c56, %c0_36] : memref<72x768xf32, #tpu.memory_space<vmem>>, vector<8x750xf32>
    tpu.vector_store %arg12[%c56, %c0_36], %27 {strides = array<i32>} : memref<72x768xf32, #tpu.memory_space<vmem>>, vector<8x750xf32>,
    %cst_37 = arith.constant 0.000000e+00 : f32
    %29 = vector.broadcast %cst_37 : f32 to vector<8x18xf32>
    %c56_38 = arith.constant 56 : index
    %c750 = arith.constant 750 : index
    %30 = vector.load %arg12[%c56_38, %c750] : memref<72x768xf32, #tpu.memory_space<vmem>>, vector<8x18xf32>
    tpu.vector_store %arg12[%c56_38, %c750], %29 {strides = array<i32>} : memref<72x768xf32, #tpu.memory_space<vmem>>, vector<8x18xf32>,
    %c0_39 = arith.constant 0 : index
    %c19_40 = arith.constant 19 : index
    %31 = vector.load %arg1[%c0_39, %c19_40] : memref<8x768xf32, #tpu.memory_space<vmem>>, vector<8x749xf32>
    %c64 = arith.constant 64 : index
    %c0_41 = arith.constant 0 : index
    %32 = vector.load %arg12[%c64, %c0_41] : memref<72x768xf32, #tpu.memory_space<vmem>>, vector<8x749xf32>
    tpu.vector_store %arg12[%c64, %c0_41], %31 {strides = array<i32>} : memref<72x768xf32, #tpu.memory_space<vmem>>, vector<8x749xf32>,
    %cst_42 = arith.constant 0.000000e+00 : f32
    %33 = vector.broadcast %cst_42 : f32 to vector<8x19xf32>
    %c64_43 = arith.constant 64 : index
    %c749 = arith.constant 749 : index
    %34 = vector.load %arg12[%c64_43, %c749] : memref<72x768xf32, #tpu.memory_space<vmem>>, vector<8x19xf32>
    tpu.vector_store %arg12[%c64_43, %c749], %33 {strides = array<i32>} : memref<72x768xf32, #tpu.memory_space<vmem>>, vector<8x19xf32>,
    %c0_44 = arith.constant 0 : index
    %c0_45 = arith.constant 0 : index
    %35 = vector.load %arg2[%c0_44, %c0_45] : memref<8x72xf32, #tpu.memory_space<vmem>>, vector<8x72xf32>
    %c0_46 = arith.constant 0 : index
    %c0_47 = arith.constant 0 : index
    %36 = vector.load %arg12[%c0_46, %c0_47] : memref<72x768xf32, #tpu.memory_space<vmem>>, vector<72x768xf32>
    %cst_48 = arith.constant dense<0.000000e+00> : vector<8x768xf32>
    %37 = tpu.matmul %35, %36, %cst_48 {dimension_numbers = #tpu.dot_dimension_numbers<[1], [0], [0], [1], [0, 0, 1, 1], [], []>} : vector<8x72xf32>, vector<72x768xf32>, vector<8x768xf32> -> vector<8x768xf32>
    %c0_49 = arith.constant 0 : index
    %c0_50 = arith.constant 0 : index
    %38 = vector.load %arg3[%c0_49, %c0_50] : memref<8x1xf32, #tpu.memory_space<vmem>>, vector<8x1xf32>
    %39 = vector.broadcast %38 : vector<8x1xf32> to vector<8x768xf32>
    %40 = arith.addf %37, %39 : vector<8x768xf32>
    %c0_51 = arith.constant 0 : index
    %c0_52 = arith.constant 0 : index
    %41 = vector.load %arg4[%c0_51, %c0_52] : memref<8x1xf32, #tpu.memory_space<vmem>>, vector<8x1xf32>
    %c0_53 = arith.constant 0 : index
    %c0_54 = arith.constant 0 : index
    %42 = vector.load %arg5[%c0_53, %c0_54] : memref<8x1xf32, #tpu.memory_space<vmem>>, vector<8x1xf32>
    %cst_55 = arith.constant dense<0.000000e+00> : vector<768xf32>
    %43 = vector.multi_reduction <add>, %40, %cst_55 [0] : vector<8x768xf32> to vector<768xf32>
    %44 = vector.shape_cast %43 : vector<768xf32> to vector<1x768xf32>
    %45 = arith.mulf %44, %0 : vector<1x768xf32>
    %46 = arith.mulf %40, %40 : vector<8x768xf32>
    %cst_56 = arith.constant dense<0.000000e+00> : vector<768xf32>
    %47 = vector.multi_reduction <add>, %46, %cst_56 [0] : vector<8x768xf32> to vector<768xf32>
    %48 = vector.shape_cast %47 : vector<768xf32> to vector<1x768xf32>
    %49 = arith.mulf %48, %0 : vector<1x768xf32>
    %50 = vector.extract_strided_slice %45 {offsets = [0, 0], sizes = [1, 384], strides = [1, 1]} : vector<1x768xf32> to vector<1x384xf32>
    %cst_57 = arith.constant dense<0.000000e+00> : vector<1xf32>
    %51 = vector.multi_reduction <add>, %50, %cst_57 [1] : vector<1x384xf32> to vector<1xf32>
    %52 = vector.shape_cast %51 : vector<1xf32> to vector<1x1xf32>
    %53 = vector.shape_cast %52 : vector<1x1xf32> to vector<1x1xf32>
    %54 = vector.broadcast %53 : vector<1x1xf32> to vector<1x384xf32>
    %55 = vector.extract_strided_slice %45 {offsets = [0, 384], sizes = [1, 384], strides = [1, 1]} : vector<1x768xf32> to vector<1x384xf32>
    %cst_58 = arith.constant dense<0.000000e+00> : vector<1xf32>
    %56 = vector.multi_reduction <add>, %55, %cst_58 [1] : vector<1x384xf32> to vector<1xf32>
    %57 = vector.shape_cast %56 : vector<1xf32> to vector<1x1xf32>
    %58 = vector.shape_cast %57 : vector<1x1xf32> to vector<1x1xf32>
    %59 = vector.broadcast %58 : vector<1x1xf32> to vector<1x384xf32>
    %60 = tpu.concatenate %54, %59 in 1 : vector<1x384xf32>, vector<1x384xf32> -> vector<1x768xf32>
    %cst_59 = arith.constant 4.8828125E-4 : f32
    %61 = vector.broadcast %cst_59 : f32 to vector<1x768xf32>
    %62 = arith.mulf %60, %61 : vector<1x768xf32>
    %63 = vector.extract_strided_slice %49 {offsets = [0, 0], sizes = [1, 384], strides = [1, 1]} : vector<1x768xf32> to vector<1x384xf32>
    %cst_60 = arith.constant dense<0.000000e+00> : vector<1xf32>
    %64 = vector.multi_reduction <add>, %63, %cst_60 [1] : vector<1x384xf32> to vector<1xf32>
    %65 = vector.shape_cast %64 : vector<1xf32> to vector<1x1xf32>
    %66 = vector.shape_cast %65 : vector<1x1xf32> to vector<1x1xf32>
    %67 = vector.broadcast %66 : vector<1x1xf32> to vector<1x384xf32>
    %68 = vector.extract_strided_slice %49 {offsets = [0, 384], sizes = [1, 384], strides = [1, 1]} : vector<1x768xf32> to vector<1x384xf32>
    %cst_61 = arith.constant dense<0.000000e+00> : vector<1xf32>
    %69 = vector.multi_reduction <add>, %68, %cst_61 [1] : vector<1x384xf32> to vector<1xf32>
    %70 = vector.shape_cast %69 : vector<1xf32> to vector<1x1xf32>
    %71 = vector.shape_cast %70 : vector<1x1xf32> to vector<1x1xf32>
    %72 = vector.broadcast %71 : vector<1x1xf32> to vector<1x384xf32>
    %73 = tpu.concatenate %67, %72 in 1 : vector<1x384xf32>, vector<1x384xf32> -> vector<1x768xf32>
    %cst_62 = arith.constant 4.8828125E-4 : f32
    %74 = vector.broadcast %cst_62 : f32 to vector<1x768xf32>
    %75 = arith.mulf %73, %74 : vector<1x768xf32>
    %76 = arith.mulf %62, %62 : vector<1x768xf32>
    %77 = arith.subf %75, %76 : vector<1x768xf32>
    %cst_63 = arith.constant 0.000000e+00 : f32
    %78 = vector.broadcast %cst_63 : f32 to vector<1x768xf32>
    %79 = arith.maximumf %77, %78 : vector<1x768xf32>
    %cst_64 = arith.constant 9.99999974E-6 : f32
    %80 = vector.broadcast %cst_64 : f32 to vector<1x768xf32>
    %81 = arith.addf %79, %80 : vector<1x768xf32>
    %82 = math.rsqrt %81 : vector<1x768xf32>
    %83 = vector.broadcast %62 : vector<1x768xf32> to vector<8x768xf32>
    %84 = arith.subf %40, %83 : vector<8x768xf32>
    %85 = vector.broadcast %82 : vector<1x768xf32> to vector<8x768xf32>
    %86 = arith.mulf %84, %85 : vector<8x768xf32>
    %87 = vector.broadcast %41 : vector<8x1xf32> to vector<8x768xf32>
    %88 = arith.mulf %86, %87 : vector<8x768xf32>
    %89 = vector.broadcast %42 : vector<8x1xf32> to vector<8x768xf32>
    %90 = arith.addf %88, %89 : vector<8x768xf32>
    %cst_65 = arith.constant 5.000000e-01 : f32
    %91 = vector.broadcast %cst_65 : f32 to vector<8x768xf32>
    %92 = arith.mulf %91, %90 : vector<8x768xf32>
    %cst_66 = arith.constant 0.707106769 : f32
    %93 = vector.broadcast %cst_66 : f32 to vector<8x768xf32>
    %94 = arith.mulf %90, %93 : vector<8x768xf32>
    %cst_67 = arith.constant 0.000000e+00 : f32
    %95 = vector.broadcast %cst_67 : f32 to vector<8x768xf32>
    %96 = arith.cmpf olt, %94, %95 : vector<8x768xf32>
    %cst_68 = arith.constant -1.000000e+00 : f32
    %cst_69 = arith.constant 1.000000e+00 : f32
    %97 = vector.broadcast %cst_68 : f32 to vector<8x768xf32>
    %98 = vector.broadcast %cst_69 : f32 to vector<8x768xf32>
    %99 = arith.select %96, %97, %98 : vector<8x768xi1>, vector<8x768xf32>
    %100 = math.absf %94 : vector<8x768xf32>
    %cst_70 = arith.constant 0.327591091 : f32
    %101 = vector.broadcast %cst_70 : f32 to vector<8x768xf32>
    %102 = arith.mulf %101, %100 : vector<8x768xf32>
    %cst_71 = arith.constant 1.000000e+00 : f32
    %103 = vector.broadcast %cst_71 : f32 to vector<8x768xf32>
    %104 = arith.addf %103, %102 : vector<8x768xf32>
    %cst_72 = arith.constant 1.000000e+00 : f32
    %105 = vector.broadcast %cst_72 : f32 to vector<8x768xf32>
    %106 = arith.divf %105, %104 : vector<8x768xf32>
    %cst_73 = arith.constant 1.06140542 : f32
    %107 = vector.broadcast %cst_73 : f32 to vector<8x768xf32>
    %108 = arith.mulf %107, %106 : vector<8x768xf32>
    %cst_74 = arith.constant -1.45315206 : f32
    %109 = vector.broadcast %cst_74 : f32 to vector<8x768xf32>
    %110 = arith.addf %108, %109 : vector<8x768xf32>
    %111 = arith.mulf %110, %106 : vector<8x768xf32>
    %cst_75 = arith.constant 1.42141378 : f32
    %112 = vector.broadcast %cst_75 : f32 to vector<8x768xf32>
    %113 = arith.addf %111, %112 : vector<8x768xf32>
    %114 = arith.mulf %113, %106 : vector<8x768xf32>
    %cst_76 = arith.constant -0.284496725 : f32
    %115 = vector.broadcast %cst_76 : f32 to vector<8x768xf32>
    %116 = arith.addf %114, %115 : vector<8x768xf32>
    %117 = arith.mulf %116, %106 : vector<8x768xf32>
    %cst_77 = arith.constant 0.254829586 : f32
    %118 = vector.broadcast %cst_77 : f32 to vector<8x768xf32>
    %119 = arith.addf %117, %118 : vector<8x768xf32>
    %120 = arith.mulf %119, %106 : vector<8x768xf32>
    %cst_78 = arith.constant 0.000000e+00 : f32
    %121 = vector.broadcast %cst_78 : f32 to vector<8x768xf32>
    %122 = arith.subf %121, %100 : vector<8x768xf32>
    %123 = arith.mulf %122, %100 : vector<8x768xf32>
    %124 = math.exp %123 : vector<8x768xf32>
    %125 = arith.mulf %120, %124 : vector<8x768xf32>
    %cst_79 = arith.constant 1.000000e+00 : f32
    %126 = vector.broadcast %cst_79 : f32 to vector<8x768xf32>
    %127 = arith.subf %126, %125 : vector<8x768xf32>
    %128 = arith.mulf %99, %127 : vector<8x768xf32>
    %cst_80 = arith.constant 1.000000e+00 : f32
    %129 = vector.broadcast %cst_80 : f32 to vector<8x768xf32>
    %130 = arith.addf %129, %128 : vector<8x768xf32>
    %131 = arith.mulf %92, %130 : vector<8x768xf32>
    %132 = vector.broadcast %0 : vector<1x768xf32> to vector<8x768xf32>
    %133 = arith.mulf %131, %132 : vector<8x768xf32>
    %c0_81 = arith.constant 0 : index
    %c0_82 = arith.constant 0 : index
    %134 = vector.load %arg13[%c0_81, %c0_82] : memref<8x768xf32, #tpu.memory_space<vmem>>, vector<8x768xf32>
    tpu.vector_store %arg13[%c0_81, %c0_82], %133 {strides = array<i32>} : memref<8x768xf32, #tpu.memory_space<vmem>>, vector<8x768xf32>,
    %c0_83 = arith.constant 0 : index
    %c0_84 = arith.constant 0 : index
    %135 = vector.load %arg13[%c0_83, %c0_84] : memref<8x768xf32, #tpu.memory_space<vmem>>, vector<8x749xf32>
    %c0_85 = arith.constant 0 : index
    %c19_86 = arith.constant 19 : index
    %136 = vector.load %arg12[%c0_85, %c19_86] : memref<72x768xf32, #tpu.memory_space<vmem>>, vector<8x749xf32>
    tpu.vector_store %arg12[%c0_85, %c19_86], %135 {strides = array<i32>} : memref<72x768xf32, #tpu.memory_space<vmem>>, vector<8x749xf32>,
    %cst_87 = arith.constant 0.000000e+00 : f32
    %137 = vector.broadcast %cst_87 : f32 to vector<8x19xf32>
    %c0_88 = arith.constant 0 : index
    %c0_89 = arith.constant 0 : index
    %138 = vector.load %arg12[%c0_88, %c0_89] : memref<72x768xf32, #tpu.memory_space<vmem>>, vector<8x19xf32>
    tpu.vector_store %arg12[%c0_88, %c0_89], %137 {strides = array<i32>} : memref<72x768xf32, #tpu.memory_space<vmem>>, vector<8x19xf32>,
    %c0_90 = arith.constant 0 : index
    %c0_91 = arith.constant 0 : index
    %139 = vector.load %arg13[%c0_90, %c0_91] : memref<8x768xf32, #tpu.memory_space<vmem>>, vector<8x750xf32>
    %c8_92 = arith.constant 8 : index
    %c18_93 = arith.constant 18 : index
    %140 = vector.load %arg12[%c8_92, %c18_93] : memref<72x768xf32, #tpu.memory_space<vmem>>, vector<8x750xf32>
    tpu.vector_store %arg12[%c8_92, %c18_93], %139 {strides = array<i32>} : memref<72x768xf32, #tpu.memory_space<vmem>>, vector<8x750xf32>,
    %cst_94 = arith.constant 0.000000e+00 : f32
    %141 = vector.broadcast %cst_94 : f32 to vector<8x18xf32>
    %c8_95 = arith.constant 8 : index
    %c0_96 = arith.constant 0 : index
    %142 = vector.load %arg12[%c8_95, %c0_96] : memref<72x768xf32, #tpu.memory_space<vmem>>, vector<8x18xf32>
    tpu.vector_store %arg12[%c8_95, %c0_96], %141 {strides = array<i32>} : memref<72x768xf32, #tpu.memory_space<vmem>>, vector<8x18xf32>,
    %c0_97 = arith.constant 0 : index
    %c0_98 = arith.constant 0 : index
    %143 = vector.load %arg13[%c0_97, %c0_98] : memref<8x768xf32, #tpu.memory_space<vmem>>, vector<8x751xf32>
    %c16_99 = arith.constant 16 : index
    %c17_100 = arith.constant 17 : index
    %144 = vector.load %arg12[%c16_99, %c17_100] : memref<72x768xf32, #tpu.memory_space<vmem>>, vector<8x751xf32>
    tpu.vector_store %arg12[%c16_99, %c17_100], %143 {strides = array<i32>} : memref<72x768xf32, #tpu.memory_space<vmem>>, vector<8x751xf32>,
    %cst_101 = arith.constant 0.000000e+00 : f32
    %145 = vector.broadcast %cst_101 : f32 to vector<8x17xf32>
    %c16_102 = arith.constant 16 : index
    %c0_103 = arith.constant 0 : index
    %146 = vector.load %arg12[%c16_102, %c0_103] : memref<72x768xf32, #tpu.memory_space<vmem>>, vector<8x17xf32>
    tpu.vector_store %arg12[%c16_102, %c0_103], %145 {strides = array<i32>} : memref<72x768xf32, #tpu.memory_space<vmem>>, vector<8x17xf32>,
    %c0_104 = arith.constant 0 : index
    %c0_105 = arith.constant 0 : index
    %147 = vector.load %arg13[%c0_104, %c0_105] : memref<8x768xf32, #tpu.memory_space<vmem>>, vector<8x767xf32>
    %c24_106 = arith.constant 24 : index
    %c1_107 = arith.constant 1 : index
    %148 = vector.load %arg12[%c24_106, %c1_107] : memref<72x768xf32, #tpu.memory_space<vmem>>, vector<8x767xf32>
    tpu.vector_store %arg12[%c24_106, %c1_107], %147 {strides = array<i32>} : memref<72x768xf32, #tpu.memory_space<vmem>>, vector<8x767xf32>,
    %cst_108 = arith.constant 0.000000e+00 : f32
    %149 = vector.broadcast %cst_108 : f32 to vector<8x1xf32>
    %c24_109 = arith.constant 24 : index
    %c0_110 = arith.constant 0 : index
    %150 = vector.load %arg12[%c24_109, %c0_110] : memref<72x768xf32, #tpu.memory_space<vmem>>, vector<8x1xf32>
    tpu.vector_store %arg12[%c24_109, %c0_110], %149 {strides = array<i32>} : memref<72x768xf32, #tpu.memory_space<vmem>>, vector<8x1xf32>,
    %c0_111 = arith.constant 0 : index
    %c0_112 = arith.constant 0 : index
    %151 = vector.load %arg13[%c0_111, %c0_112] : memref<8x768xf32, #tpu.memory_space<vmem>>, vector<8x768xf32>
    %c32_113 = arith.constant 32 : index
    %c0_114 = arith.constant 0 : index
    %152 = vector.load %arg12[%c32_113, %c0_114] : memref<72x768xf32, #tpu.memory_space<vmem>>, vector<8x768xf32>
    tpu.vector_store %arg12[%c32_113, %c0_114], %151 {strides = array<i32>} : memref<72x768xf32, #tpu.memory_space<vmem>>, vector<8x768xf32>,
    %c0_115 = arith.constant 0 : index
    %c1_116 = arith.constant 1 : index
    %153 = vector.load %arg13[%c0_115, %c1_116] : memref<8x768xf32, #tpu.memory_space<vmem>>, vector<8x767xf32>
    %c40_117 = arith.constant 40 : index
    %c0_118 = arith.constant 0 : index
    %154 = vector.load %arg12[%c40_117, %c0_118] : memref<72x768xf32, #tpu.memory_space<vmem>>, vector<8x767xf32>
    tpu.vector_store %arg12[%c40_117, %c0_118], %153 {strides = array<i32>} : memref<72x768xf32, #tpu.memory_space<vmem>>, vector<8x767xf32>,
    %cst_119 = arith.constant 0.000000e+00 : f32
    %155 = vector.broadcast %cst_119 : f32 to vector<8x1xf32>
    %c40_120 = arith.constant 40 : index
    %c767_121 = arith.constant 767 : index
    %156 = vector.load %arg12[%c40_120, %c767_121] : memref<72x768xf32, #tpu.memory_space<vmem>>, vector<8x1xf32>
    tpu.vector_store %arg12[%c40_120, %c767_121], %155 {strides = array<i32>} : memref<72x768xf32, #tpu.memory_space<vmem>>, vector<8x1xf32>,
    %c0_122 = arith.constant 0 : index
    %c17_123 = arith.constant 17 : index
    %157 = vector.load %arg13[%c0_122, %c17_123] : memref<8x768xf32, #tpu.memory_space<vmem>>, vector<8x751xf32>
    %c48_124 = arith.constant 48 : index
    %c0_125 = arith.constant 0 : index
    %158 = vector.load %arg12[%c48_124, %c0_125] : memref<72x768xf32, #tpu.memory_space<vmem>>, vector<8x751xf32>
    tpu.vector_store %arg12[%c48_124, %c0_125], %157 {strides = array<i32>} : memref<72x768xf32, #tpu.memory_space<vmem>>, vector<8x751xf32>,
    %cst_126 = arith.constant 0.000000e+00 : f32
    %159 = vector.broadcast %cst_126 : f32 to vector<8x17xf32>
    %c48_127 = arith.constant 48 : index
    %c751_128 = arith.constant 751 : index
    %160 = vector.load %arg12[%c48_127, %c751_128] : memref<72x768xf32, #tpu.memory_space<vmem>>, vector<8x17xf32>
    tpu.vector_store %arg12[%c48_127, %c751_128], %159 {strides = array<i32>} : memref<72x768xf32, #tpu.memory_space<vmem>>, vector<8x17xf32>,
    %c0_129 = arith.constant 0 : index
    %c18_130 = arith.constant 18 : index
    %161 = vector.load %arg13[%c0_129, %c18_130] : memref<8x768xf32, #tpu.memory_space<vmem>>, vector<8x750xf32>
    %c56_131 = arith.constant 56 : index
    %c0_132 = arith.constant 0 : index
    %162 = vector.load %arg12[%c56_131, %c0_132] : memref<72x768xf32, #tpu.memory_space<vmem>>, vector<8x750xf32>
    tpu.vector_store %arg12[%c56_131, %c0_132], %161 {strides = array<i32>} : memref<72x768xf32, #tpu.memory_space<vmem>>, vector<8x750xf32>,
    %cst_133 = arith.constant 0.000000e+00 : f32
    %163 = vector.broadcast %cst_133 : f32 to vector<8x18xf32>
    %c56_134 = arith.constant 56 : index
    %c750_135 = arith.constant 750 : index
    %164 = vector.load %arg12[%c56_134, %c750_135] : memref<72x768xf32, #tpu.memory_space<vmem>>, vector<8x18xf32>
    tpu.vector_store %arg12[%c56_134, %c750_135], %163 {strides = array<i32>} : memref<72x768xf32, #tpu.memory_space<vmem>>, vector<8x18xf32>,
    %c0_136 = arith.constant 0 : index
    %c19_137 = arith.constant 19 : index
    %165 = vector.load %arg13[%c0_136, %c19_137] : memref<8x768xf32, #tpu.memory_space<vmem>>, vector<8x749xf32>
    %c64_138 = arith.constant 64 : index
    %c0_139 = arith.constant 0 : index
    %166 = vector.load %arg12[%c64_138, %c0_139] : memref<72x768xf32, #tpu.memory_space<vmem>>, vector<8x749xf32>
    tpu.vector_store %arg12[%c64_138, %c0_139], %165 {strides = array<i32>} : memref<72x768xf32, #tpu.memory_space<vmem>>, vector<8x749xf32>,
    %cst_140 = arith.constant 0.000000e+00 : f32
    %167 = vector.broadcast %cst_140 : f32 to vector<8x19xf32>
    %c64_141 = arith.constant 64 : index
    %c749_142 = arith.constant 749 : index
    %168 = vector.load %arg12[%c64_141, %c749_142] : memref<72x768xf32, #tpu.memory_space<vmem>>, vector<8x19xf32>
    tpu.vector_store %arg12[%c64_141, %c749_142], %167 {strides = array<i32>} : memref<72x768xf32, #tpu.memory_space<vmem>>, vector<8x19xf32>,
    %c0_143 = arith.constant 0 : index
    %c0_144 = arith.constant 0 : index
    %169 = vector.load %arg6[%c0_143, %c0_144] : memref<8x72xf32, #tpu.memory_space<vmem>>, vector<8x72xf32>
    %c0_145 = arith.constant 0 : index
    %c0_146 = arith.constant 0 : index
    %170 = vector.load %arg12[%c0_145, %c0_146] : memref<72x768xf32, #tpu.memory_space<vmem>>, vector<72x768xf32>
    %cst_147 = arith.constant dense<0.000000e+00> : vector<8x768xf32>
    %171 = tpu.matmul %169, %170, %cst_147 {dimension_numbers = #tpu.dot_dimension_numbers<[1], [0], [0], [1], [0, 0, 1, 1], [], []>} : vector<8x72xf32>, vector<72x768xf32>, vector<8x768xf32> -> vector<8x768xf32>
    %c0_148 = arith.constant 0 : index
    %c0_149 = arith.constant 0 : index
    %172 = vector.load %arg7[%c0_148, %c0_149] : memref<8x1xf32, #tpu.memory_space<vmem>>, vector<8x1xf32>
    %173 = vector.broadcast %172 : vector<8x1xf32> to vector<8x768xf32>
    %174 = arith.addf %171, %173 : vector<8x768xf32>
    %c0_150 = arith.constant 0 : index
    %c0_151 = arith.constant 0 : index
    %175 = vector.load %arg8[%c0_150, %c0_151] : memref<8x1xf32, #tpu.memory_space<vmem>>, vector<8x1xf32>
    %c0_152 = arith.constant 0 : index
    %c0_153 = arith.constant 0 : index
    %176 = vector.load %arg9[%c0_152, %c0_153] : memref<8x1xf32, #tpu.memory_space<vmem>>, vector<8x1xf32>
    %cst_154 = arith.constant dense<0.000000e+00> : vector<768xf32>
    %177 = vector.multi_reduction <add>, %174, %cst_154 [0] : vector<8x768xf32> to vector<768xf32>
    %178 = vector.shape_cast %177 : vector<768xf32> to vector<1x768xf32>
    %179 = arith.mulf %178, %0 : vector<1x768xf32>
    %180 = arith.mulf %174, %174 : vector<8x768xf32>
    %cst_155 = arith.constant dense<0.000000e+00> : vector<768xf32>
    %181 = vector.multi_reduction <add>, %180, %cst_155 [0] : vector<8x768xf32> to vector<768xf32>
    %182 = vector.shape_cast %181 : vector<768xf32> to vector<1x768xf32>
    %183 = arith.mulf %182, %0 : vector<1x768xf32>
    %184 = vector.extract_strided_slice %179 {offsets = [0, 0], sizes = [1, 384], strides = [1, 1]} : vector<1x768xf32> to vector<1x384xf32>
    %cst_156 = arith.constant dense<0.000000e+00> : vector<1xf32>
    %185 = vector.multi_reduction <add>, %184, %cst_156 [1] : vector<1x384xf32> to vector<1xf32>
    %186 = vector.shape_cast %185 : vector<1xf32> to vector<1x1xf32>
    %187 = vector.shape_cast %186 : vector<1x1xf32> to vector<1x1xf32>
    %188 = vector.broadcast %187 : vector<1x1xf32> to vector<1x384xf32>
    %189 = vector.extract_strided_slice %179 {offsets = [0, 384], sizes = [1, 384], strides = [1, 1]} : vector<1x768xf32> to vector<1x384xf32>
    %cst_157 = arith.constant dense<0.000000e+00> : vector<1xf32>
    %190 = vector.multi_reduction <add>, %189, %cst_157 [1] : vector<1x384xf32> to vector<1xf32>
    %191 = vector.shape_cast %190 : vector<1xf32> to vector<1x1xf32>
    %192 = vector.shape_cast %191 : vector<1x1xf32> to vector<1x1xf32>
    %193 = vector.broadcast %192 : vector<1x1xf32> to vector<1x384xf32>
    %194 = tpu.concatenate %188, %193 in 1 : vector<1x384xf32>, vector<1x384xf32> -> vector<1x768xf32>
    %cst_158 = arith.constant 4.8828125E-4 : f32
    %195 = vector.broadcast %cst_158 : f32 to vector<1x768xf32>
    %196 = arith.mulf %194, %195 : vector<1x768xf32>
    %197 = vector.extract_strided_slice %183 {offsets = [0, 0], sizes = [1, 384], strides = [1, 1]} : vector<1x768xf32> to vector<1x384xf32>
    %cst_159 = arith.constant dense<0.000000e+00> : vector<1xf32>
    %198 = vector.multi_reduction <add>, %197, %cst_159 [1] : vector<1x384xf32> to vector<1xf32>
    %199 = vector.shape_cast %198 : vector<1xf32> to vector<1x1xf32>
    %200 = vector.shape_cast %199 : vector<1x1xf32> to vector<1x1xf32>
    %201 = vector.broadcast %200 : vector<1x1xf32> to vector<1x384xf32>
    %202 = vector.extract_strided_slice %183 {offsets = [0, 384], sizes = [1, 384], strides = [1, 1]} : vector<1x768xf32> to vector<1x384xf32>
    %cst_160 = arith.constant dense<0.000000e+00> : vector<1xf32>
    %203 = vector.multi_reduction <add>, %202, %cst_160 [1] : vector<1x384xf32> to vector<1xf32>
    %204 = vector.shape_cast %203 : vector<1xf32> to vector<1x1xf32>
    %205 = vector.shape_cast %204 : vector<1x1xf32> to vector<1x1xf32>
    %206 = vector.broadcast %205 : vector<1x1xf32> to vector<1x384xf32>
    %207 = tpu.concatenate %201, %206 in 1 : vector<1x384xf32>, vector<1x384xf32> -> vector<1x768xf32>
    %cst_161 = arith.constant 4.8828125E-4 : f32
    %208 = vector.broadcast %cst_161 : f32 to vector<1x768xf32>
    %209 = arith.mulf %207, %208 : vector<1x768xf32>
    %210 = arith.mulf %196, %196 : vector<1x768xf32>
    %211 = arith.subf %209, %210 : vector<1x768xf32>
    %cst_162 = arith.constant 0.000000e+00 : f32
    %212 = vector.broadcast %cst_162 : f32 to vector<1x768xf32>
    %213 = arith.maximumf %211, %212 : vector<1x768xf32>
    %cst_163 = arith.constant 9.99999974E-6 : f32
    %214 = vector.broadcast %cst_163 : f32 to vector<1x768xf32>
    %215 = arith.addf %213, %214 : vector<1x768xf32>
    %216 = math.rsqrt %215 : vector<1x768xf32>
    %217 = vector.broadcast %196 : vector<1x768xf32> to vector<8x768xf32>
    %218 = arith.subf %174, %217 : vector<8x768xf32>
    %219 = vector.broadcast %216 : vector<1x768xf32> to vector<8x768xf32>
    %220 = arith.mulf %218, %219 : vector<8x768xf32>
    %221 = vector.broadcast %175 : vector<8x1xf32> to vector<8x768xf32>
    %222 = arith.mulf %220, %221 : vector<8x768xf32>
    %223 = vector.broadcast %176 : vector<8x1xf32> to vector<8x768xf32>
    %224 = arith.addf %222, %223 : vector<8x768xf32>
    %c0_164 = arith.constant 0 : index
    %c0_165 = arith.constant 0 : index
    %225 = vector.load %arg11[%c0_164, %c0_165] : memref<8x768xf32, #tpu.memory_space<vmem>>, vector<8x768xf32>
    tpu.vector_store %arg11[%c0_164, %c0_165], %224 {strides = array<i32>} : memref<8x768xf32, #tpu.memory_space<vmem>>, vector<8x768xf32>,
    return
  }
  func.func @transform_0(%arg0: i32) -> (i32, i32) {
    %c0_i32 = arith.constant 0 : i32
    %c0_i32_0 = arith.constant 0 : i32
    return %c0_i32, %arg0 : i32, i32
  }
  func.func @transform_1(%arg0: i32) -> (i32, i32) {
    %c0_i32 = arith.constant 0 : i32
    %c0_i32_0 = arith.constant 0 : i32
    %c0_i32_1 = arith.constant 0 : i32
    return %c0_i32, %c0_i32_0 : i32, i32
  }
  func.func @transform_2(%arg0: i32) -> (i32, i32) {
    %c0_i32 = arith.constant 0 : i32
    %c0_i32_0 = arith.constant 0 : i32
    %c0_i32_1 = arith.constant 0 : i32
    return %c0_i32, %c0_i32_0 : i32, i32
  }
  func.func @transform_3(%arg0: i32) -> (i32, i32) {
    %c0_i32 = arith.constant 0 : i32
    %c0_i32_0 = arith.constant 0 : i32
    %c0_i32_1 = arith.constant 0 : i32
    return %c0_i32, %c0_i32_0 : i32, i32
  }
  func.func @transform_4(%arg0: i32) -> (i32, i32) {
    %c0_i32 = arith.constant 0 : i32
    %c0_i32_0 = arith.constant 0 : i32
    %c0_i32_1 = arith.constant 0 : i32
    return %c0_i32, %c0_i32_0 : i32, i32
  }
  func.func @transform_5(%arg0: i32) -> (i32, i32) {
    %c0_i32 = arith.constant 0 : i32
    %c0_i32_0 = arith.constant 0 : i32
    %c0_i32_1 = arith.constant 0 : i32
    return %c0_i32, %c0_i32_0 : i32, i32
  }
  func.func @transform_6(%arg0: i32) -> (i32, i32) {
    %c0_i32 = arith.constant 0 : i32
    %c0_i32_0 = arith.constant 0 : i32
    %c0_i32_1 = arith.constant 0 : i32
    return %c0_i32, %c0_i32_0 : i32, i32
  }
  func.func @transform_7(%arg0: i32) -> (i32, i32) {
    %c0_i32 = arith.constant 0 : i32
    %c0_i32_0 = arith.constant 0 : i32
    %c0_i32_1 = arith.constant 0 : i32
    return %c0_i32, %c0_i32_0 : i32, i32
  }
  func.func @transform_8(%arg0: i32) -> (i32, i32) {
    %c0_i32 = arith.constant 0 : i32
    %c0_i32_0 = arith.constant 0 : i32
    %c0_i32_1 = arith.constant 0 : i32
    return %c0_i32, %c0_i32_0 : i32, i32
  }
  func.func @transform_9(%arg0: i32) -> (i32, i32) {
    %c0_i32 = arith.constant 0 : i32
    %c0_i32_0 = arith.constant 0 : i32
    %c0_i32_1 = arith.constant 0 : i32
    return %c0_i32, %c0_i32_0 : i32, i32
  }
  func.func @transform_10(%arg0: i32) -> (i32, i32) {
    %c0_i32 = arith.constant 0 : i32
    %c0_i32_0 = arith.constant 0 : i32
    return %c0_i32, %arg0 : i32, i32
  }
}

</mosaic_0001>

<bundles_post_ra>
// kernel: conv_twice.1
= control target key start
LH: loop header
LB: loop body
LE: loop exit
PB: predicated region body
PF: predicated region fallthrough
CT: control target
= control target key end

     0   :  { %v2034_v1 = vmov 0.0   ;;  %s2035_s15 = smov 18   ;;  %s2036_s16 = smov 19   ;;  %v2043_v7 = vmov 0   ;;  %vm116_vm0 = vcmask 1047696   ;;  %vm72_vm1 = vcmask 1047704   ;;  %s2873_s0 = inlined_call_operand.vmem [shape: f32[8,768], index: 0, kind: input, shape index: {}]   ;;  %s2874_s2 = inlined_call_operand.vmem [shape: f32[8,1], index: 2, kind: input, shape index: {}]   ;;  %s2875_s1 = inlined_call_operand.vmem [shape: f32[8,72], index: 1, kind: input, shape index: {}]   ;;  %s2876_s9 = inlined_call_operand.vmem [shape: f32[1,768], index: 9, kind: input, shape index: {}]   ;;  %s2877_s3 = inlined_call_operand.vmem [shape: f32[8,1], index: 3, kind: input, shape index: {}]   ;;  %s2878_s4 = inlined_call_operand.vmem [shape: f32[8,1], index: 4, kind: input, shape index: {}]   ;;  %s2879_s6 = inlined_call_operand.vmem [shape: f32[8,1], index: 6, kind: input, shape index: {}]   ;;  %s2880_s5 = inlined_call_operand.vmem [shape: f32[8,72], index: 5, kind: input, shape index: {}]   ;;  %s2881_s8 = inlined_call_operand.vmem [shape: f32[8,1], index: 8, kind: input, shape index: {}]   ;;  %s2882_s7 = inlined_call_operand.vmem [shape: f32[8,1], index: 7, kind: input, shape index: {}]   ;;  %s2883_s10 = inlined_call_operand.vmem [shape: f32[8,768], index: 10, kind: output, shape index: {}]  }
   0x1   :  { %v2103_v0 = vld [vmem:[%s2873_s0] sm:$0xff]  ;;  %529 = vmatprep.mubr.f32.mxu0 %v2034_v1  ;;  %600 = vmatprep.mubr.f32.mxu1 %v2034_v1  ;;  %v2114_v2 = vld [vmem:[%s2873_s0 + $0x8] sm:$0xff]  ;;  %v2123_v3 = vld [vmem:[%s2873_s0 + $0x18] sm:$0xff]  ;;  %s2037_s23 = smov 17   ;;  %s2038_s24 = smov 1   ;;  %vm104_vm2 = vcmask 146432  }
   0x2   :  { %92 = vrot.lane.b32.xlu1 %v2103_v0, %s2035_s15  ;;  %48 = vrot.lane.b32.xlu0 %v2103_v0, %s2036_s16  ;;  %v2128_v4 = vld [vmem:[%s2873_s0 + $0x10] sm:$0xff]  ;;  %s2039_s25 = smov 127   ;;  %v2165_v5 = vld [vmem:[%s2873_s0 + $0x20] sm:$0xff]  ;;  %s2040_s28 = smov 111   ;;  %vm60_vm3 = vcmask 154624   ;;  %vm160_vm4 = vcmask 1047688  }
   0x3   :  { %s2041_s29 = smov 110   ;;  %v2194_v6 = vld [vmem:[%s2873_s0 + $0x28] sm:$0xff]  ;;  %s2042_s12 = smov 109   ;;  %2000 = vset.pattern.permute.xlu0 %v2043_v7  ;;  %v455_v8 = vld [vmem:[%s2874_s2] sm:$0xff]  ;;  %2001 = vset.pattern.permute.xlu1 %v2043_v7  ;;  %vm148_vm5 = vcmask 138240   ;;  %vm2884_vm6 = vcmask 7168  }
   0x4   :  { %vm204_vm7 = vcmask 1047560   ;;  %vm248_vm8 = vcmask 1039360   ;;  %vm292_vm9 = vcmask 908288   ;;  %vm336_vm10 = vcmask 900096  }
   0x5   :  { %vm380_vm11 = vcmask 891904   ;;  %vm461_vm12 = vcmask 588800   ;;  %vm2887_vm13 = vcmask 1048440   ;;  %vm266_vm14 = vcmask 1048568  }
   0x6   :  { %94 = vrot.lane.b32.xlu1 %v2114_v2, %s2035_s15  ;;  %50 = vrot.lane.b32.xlu0 %v2114_v2, %s2036_s16  ;;  %vm2885_vm15 = vcmask 1048424  }
   0xa   :  { %54 = vrot.lane.b32.xlu1 %v2123_v3, %s2036_s16  ;;  %52 = vrot.lane.b32.xlu0 %v2128_v4, %s2036_s16 }
   0xe   :  { %98 = vrot.lane.b32.xlu1 %v2123_v3, %s2035_s15  ;;  %96 = vrot.lane.b32.xlu0 %v2128_v4, %s2035_s15 }
  0x12   :  { %138 = vrot.lane.b32.xlu1 %v2114_v2, %s2037_s23  ;;  %136 = vrot.lane.b32.xlu0 %v2103_v0, %s2037_s23 }
  0x16   :  { %182 = vrot.lane.b32.xlu1 %v2114_v2, %s2038_s24  ;;  %180 = vrot.lane.b32.xlu0 %v2103_v0, %s2038_s24 }
  0x1a   :  { %142 = vrot.lane.b32.xlu1 %v2123_v3, %s2037_s23  ;;  %140 = vrot.lane.b32.xlu0 %v2128_v4, %s2037_s23 }
  0x1e   :  { %186 = vrot.lane.b32.xlu1 %v2123_v3, %s2038_s24  ;;  %184 = vrot.lane.b32.xlu0 %v2128_v4, %s2038_s24 }
  0x22   :  { %240 = vrot.lane.b32.xlu1 %v2128_v4, %s2039_s25  ;;  %238 = vrot.lane.b32.xlu0 %v2114_v2, %s2039_s25 }
  0x26   :  { %242 = vrot.lane.b32.xlu1 %v2123_v3, %s2039_s25  ;;  %236 = vrot.lane.b32.xlu0 %v2103_v0, %s2039_s25 }
  0x2a   :  { %282 = vrot.lane.b32.xlu1 %v2114_v2, %s2040_s28  ;;  %244 = vrot.lane.b32.xlu0 %v2165_v5, %s2039_s25 }
  0x2e   :  { %326 = vrot.lane.b32.xlu1 %v2114_v2, %s2041_s29  ;;  %284 = vrot.lane.b32.xlu0 %v2128_v4, %s2040_s28 }
  0x32   :  { %280 = vrot.lane.b32.xlu1 %v2103_v0, %s2040_s28  ;;  %328 = vrot.lane.b32.xlu0 %v2128_v4, %s2041_s29 }
  0x36   :  { %286 = vrot.lane.b32.xlu1 %v2123_v3, %s2040_s28  ;;  %324 = vrot.lane.b32.xlu0 %v2103_v0, %s2041_s29 }
  0x3a   :  { %330 = vrot.lane.b32.xlu1 %v2123_v3, %s2041_s29  ;;  %288 = vrot.lane.b32.xlu0 %v2165_v5, %s2040_s28 }
  0x3e   :  { %56 = vrot.lane.b32.xlu1 %v2165_v5, %s2036_s16  ;;  %332 = vrot.lane.b32.xlu0 %v2165_v5, %s2041_s29 }
  0x42   :  { %100 = vrot.lane.b32.xlu1 %v2165_v5, %s2035_s15  ;;  %58 = vrot.lane.b32.xlu0 %v2194_v6, %s2036_s16 }
  0x46   :  { %370 = vrot.lane.b32.xlu1 %v2114_v2, %s2042_s12  ;;  %102 = vrot.lane.b32.xlu0 %v2194_v6, %s2035_s15 }
  0x4a   :  { %368 = vrot.lane.b32.xlu1 %v2103_v0, %s2042_s12  ;;  %372 = vrot.lane.b32.xlu0 %v2128_v4, %s2042_s12 }
  0x4e   :  { %376 = vrot.lane.b32.xlu1 %v2165_v5, %s2042_s12  ;;  %374 = vrot.lane.b32.xlu0 %v2123_v3, %s2042_s12 }
  0x52   :  { %146 = vrot.lane.b32.xlu1 %v2194_v6, %s2037_s23  ;;  %144 = vrot.lane.b32.xlu0 %v2165_v5, %s2037_s23 }
  0x56   :  { %190 = vrot.lane.b32.xlu1 %v2194_v6, %s2038_s24  ;;  %188 = vrot.lane.b32.xlu0 %v2165_v5, %s2038_s24 }
  0x5a   :  { %290 = vrot.lane.b32.xlu1 %v2194_v6, %s2040_s28  ;;  %246 = vrot.lane.b32.xlu0 %v2194_v6, %s2039_s25 }
  0x5e   :  { %378 = vrot.lane.b32.xlu1 %v2194_v6, %s2042_s12  ;;  %334 = vrot.lane.b32.xlu0 %v2194_v6, %s2041_s29 }
  0x62   :  { %458 = vperm.xlu0 %2000, %v455_v8  }
  0x74   :  { %v93_v9 = vpop.permute.xlu1 %92  ;;  %v49_v10 = vpop.permute.xlu0 %48 }
  0x75   :  { %117 = vst.msk [vmem:[#allocation2 + $0x30] sm:$0xff] %vm116_vm0, %v93_v9 }
  0x76   :  { %73 = vst.msk [vmem:[#allocation2] sm:$0xff] %vm72_vm1, %v49_v10 }
  0x77   :  { %123 = vst.msk [vmem:[#allocation2 + $0x30] sm:$0xff] %vm104_vm2, %v2034_v1 }
  0x78   :  { %79 = vst.msk [vmem:[#allocation2] sm:$0xff] %vm60_vm3, %v2034_v1  ;;  %v95_v11 = vpop.permute.xlu1 %94  ;;  %v51_v12 = vpop.permute.xlu0 %50 }
  0x79   :  { %v105_v13 = vsel %vm104_vm2, %v93_v9, %v95_v11  ;;  %v61_v14 = vsel %vm60_vm3, %v49_v10, %v51_v12 }
  0x7a   :  { %v1893_v15 = vpack.c.bf16 %v105_v13, %v61_v14 }
  0x7c   :  { %v2239_v16 = vpop.permute.xlu1 %54  ;;  %v53_v17 = vpop.permute.xlu0 %52  ;;  %1894 = vmatprep.subr.bf16.mxu0 %v1893_v15 }
  0x7d   :  { %v62_v23 = vsel %vm60_vm3, %v51_v12, %v53_v17  ;;  %v63_v24 = vsel %vm60_vm3, %v53_v17, %v2239_v16 }
  0x7e   :  { %v407_v19 = vld [vmem:[#allocation2 + $0x30] sm:$0xff] }
  0x7f   :  { %v401_v18 = vld [vmem:[#allocation2] sm:$0xff] }
  0x80   :  { %v1895_v20 = vpack.c.bf16 %v407_v19, %v401_v18  ;;  %v2241_v21 = vpop.permute.xlu1 %98  ;;  %v97_v22 = vpop.permute.xlu0 %96 }
  0x81   :  { %v106_v25 = vsel %vm104_vm2, %v95_v11, %v97_v22  ;;  %v107_v26 = vsel %vm104_vm2, %v97_v22, %v2241_v21 }
  0x82   :  { %1896 = vmatpush1.bf16.msra.mxu0 %v1895_v20  ;;  %v1909_v27 = vpack.c.bf16 %v107_v26, %v63_v24  ;;  %v1911_v28 = vpack.c.bf16 %v106_v25, %v62_v23 }
  0x84   :  { %v139_v29 = vpop.permute.xlu1 %138  ;;  %v137_v30 = vpop.permute.xlu0 %136  ;;  %1910 = vmatprep.subr.bf16.mxu1 %v1909_v27 }
  0x85   :  { %161 = vst.msk [vmem:[#allocation2 + $0x60] sm:$0xff] %vm160_vm4, %v137_v30  ;;  %1912 = vmatpush1.bf16.msra.mxu1 %v1911_v28  ;;  %v149_v33 = vsel %vm148_vm5, %v137_v30, %v139_v29 }
  0x86   :  { %167 = vst.msk [vmem:[#allocation2 + $0x60] sm:$0xff] %vm148_vm5, %v2034_v1 }
  0x88   :  { %v183_v31 = vpop.permute.xlu1 %182  ;;  %v181_v32 = vpop.permute.xlu0 %180 }
  0x89   :  { %v193_v34 = vsel %vm2884_vm6, %v181_v32, %v183_v31  ;;  %205 = vst.msk [vmem:[#allocation2 + $0x90] sm:$0xff] %vm204_vm7, %v181_v32 }
  0x8a   :  { %211 = vst.msk [vmem:[#allocation2 + $0x90] sm:$0xff] %vm2884_vm6, %v2034_v1  ;;  %v1897_v35 = vpack.c.bf16 %v193_v34, %v149_v33 }
  0x8c   :  { %v2257_v36 = vpop.permute.xlu1 %142  ;;  %v141_v37 = vpop.permute.xlu0 %140  ;;  %1898 = vmatprep.subr.bf16.mxu0 %v1897_v35 }
  0x8d   :  { %v413_v38 = vld [vmem:[#allocation2 + $0x60] sm:$0xff]  ;;  %v150_v41 = vsel %vm148_vm5, %v139_v29, %v141_v37  ;;  %v151_v42 = vsel %vm148_vm5, %v141_v37, %v2257_v36 }
  0x90   :  { %v2259_v39 = vpop.permute.xlu1 %186  ;;  %v185_v40 = vpop.permute.xlu0 %184 }
  0x91   :  { %v194_v43 = vsel %vm2884_vm6, %v183_v31, %v185_v40  ;;  %v195_v44 = vsel %vm2884_vm6, %v185_v40, %v2259_v39  ;;  %v419_v45 = vld [vmem:[#allocation2 + $0x90] sm:$0xff] }
  0x92   :  { %v1913_v46 = vpack.c.bf16 %v195_v44, %v151_v42  ;;  %v1915_v47 = vpack.c.bf16 %v194_v43, %v150_v41  ;;  %v1899_v48 = vpack.c.bf16 %v419_v45, %v413_v38  ;;  %v2301_v38 = vld [vmem:[%s2875_s1] sm:$0xff] }
  0x94   :  { %v241_v49 = vpop.permute.xlu1 %240  ;;  %v239_v50 = vpop.permute.xlu0 %238  ;;  %1914 = vmatprep.subr.bf16.mxu1 %v1913_v46  ;;  %1900 = vmatpush1.bf16.msra.mxu0 %v1899_v48 }
  0x95   :  { %v250_v51 = vsel %vm248_vm8, %v239_v50, %v241_v49  ;;  %1916 = vmatpush1.bf16.msra.mxu1 %v1915_v47 }
  0x96   :  { %v1901_v52 = vpack.c.bf16 %v250_v51, %v2114_v2 }
  0x98   :  { %v243_v53 = vpop.permute.xlu1 %242  ;;  %v237_v54 = vpop.permute.xlu0 %236  ;;  %1902 = vmatprep.subr.bf16.mxu0 %v1901_v52 }
  0x99   :  { %v249_v55 = vsel %vm248_vm8, %v237_v54, %v239_v50  ;;  %v251_v57 = vsel %vm248_vm8, %v241_v49, %v243_v53 }
  0x9a   :  { %v1903_v56 = vpack.c.bf16 %v249_v55, %v2103_v0  ;;  %v1919_v62 = vpack.c.bf16 %v251_v57, %v2128_v4 }
  0x9c   :  { %v283_v58 = vpop.permute.xlu1 %282  ;;  %v2272_v59 = vpop.permute.xlu0 %244  ;;  %1904 = vmatpush1.bf16.msra.mxu0 %v1903_v56 }
  0x9d   :  { %v252_v60 = vsel %vm248_vm8, %v243_v53, %v2272_v59 }
  0x9e   :  { %v1917_v61 = vpack.c.bf16 %v252_v60, %v2123_v3 }
  0xa0   :  { %v327_v63 = vpop.permute.xlu1 %326  ;;  %v285_v2 = vpop.permute.xlu0 %284  ;;  %1918 = vmatprep.subr.bf16.mxu1 %v1917_v61 }
  0xa1   :  { %1920 = vmatpush1.bf16.msra.mxu1 %v1919_v62  ;;  %v294_v8 = vsel %vm292_vm9, %v283_v58, %v285_v2 }
  0xa4   :  { %v281_v0 = vpop.permute.xlu1 %280  ;;  %v329_v7 = vpop.permute.xlu0 %328 }
  0xa5   :  { %v338_v9 = vsel %vm336_vm10, %v327_v63, %v329_v7  ;;  %v293_v3 = vsel %vm292_vm9, %v281_v0, %v283_v58 }
  0xa6   :  { %v1905_v10 = vpack.c.bf16 %v338_v9, %v294_v8 }
  0xa8   :  { %v287_v11 = vpop.permute.xlu1 %286  ;;  %v325_v12 = vpop.permute.xlu0 %324  ;;  %1906 = vmatprep.subr.bf16.mxu0 %v1905_v10 }
  0xa9   :  { %v337_v4 = vsel %vm336_vm10, %v325_v12, %v327_v63  ;;  %v295_v23 = vsel %vm292_vm9, %v285_v2, %v287_v11 }
  0xaa   :  { %v1907_v13 = vpack.c.bf16 %v337_v4, %v293_v3 }
  0xac   :  { %v331_v14 = vpop.permute.xlu1 %330  ;;  %v2282_v15 = vpop.permute.xlu0 %288  ;;  %1908 = vmatpush1.bf16.msra.mxu0 %v1907_v13 }
  0xad   :  { %v339_v17 = vsel %vm336_vm10, %v329_v7, %v331_v14  ;;  %v296_v20 = vsel %vm292_vm9, %v287_v11, %v2282_v15 }
  0xae   :  { %v1923_v25 = vpack.c.bf16 %v339_v17, %v295_v23 }
  0xb0   :  { %v57_v18 = vpop.permute.xlu1 %56  ;;  %v2285_v19 = vpop.permute.xlu0 %332 }
  0xb1   :  { %v340_v22 = vsel %vm336_vm10, %v331_v14, %v2285_v19  ;;  %v64_v40 = vsel %vm60_vm3, %v2239_v16, %v57_v18 }
  0xb2   :  { %v1921_v24 = vpack.c.bf16 %v340_v22, %v296_v20 }
  0xb4   :  { %v101_v26 = vpop.permute.xlu1 %100  ;;  %v59_v27 = vpop.permute.xlu0 %58  ;;  %1922 = vmatprep.subr.bf16.mxu1 %v1921_v24 }
  0xb5   :  { %1924 = vmatpush1.bf16.msra.mxu1 %v1923_v25  ;;  %v108_v31 = vsel %vm104_vm2, %v2241_v21, %v101_v26  ;;  %v65_v34 = vsel %vm60_vm3, %v57_v18, %v59_v27 }
  0xb6   :  { %v1927_v21 = vpack.c.bf16 %v108_v31, %v64_v40 }
  0xb8   :  { %v371_v28 = vpop.permute.xlu1 %370  ;;  %v103_v29 = vpop.permute.xlu0 %102 }
  0xb9   :  { %v109_v30 = vsel %vm104_vm2, %v101_v26, %v103_v29  ;;  %v2373_v29 = vld [vmem:[%s2876_s9] sm:$0x3f] }
  0xba   :  { %v1925_v41 = vpack.c.bf16 %v109_v30, %v65_v34 }
  0xbc   :  { %v369_v32 = vpop.permute.xlu1 %368  ;;  %v373_v33 = vpop.permute.xlu0 %372 }
  0xbd   :  { %v381_v35 = vsel %vm380_vm11, %v369_v32, %v371_v28  ;;  %v382_v37 = vsel %vm380_vm11, %v371_v28, %v373_v33 }
  0xbe   :  { %481 = vmatprep.subr.mxu0 %v382_v37 }
  0xbf   :  { %482 = vmatpush1.msra.mxu0 %v381_v35 }
  0xc0   :  { %v377_v42 = vpop.permute.xlu1 %376  ;;  %v375_v43 = vpop.permute.xlu0 %374  ;;  %1926 = vmatprep.subr.bf16.mxu0 %v1925_v41  ;;  %1887 = vmatmul.mubr.msk.f32.vlgmr.msra.gmra.mrb[0].mxu0 %vm461_vm12, %v2301_v38 }
  0xc1   :  { %v383_v44 = vsel %vm380_vm11, %v373_v33, %v375_v43  ;;  %v384_v45 = vsel %vm380_vm11, %v375_v43, %v377_v42  ;;  %1928 = vmatpush1.bf16.msra.mxu0 %v1927_v21  ;;  %671 = vmatprep.mubr.f32.mxu0 %v2034_v1 }
  0xc2   :  { %552 = vmatprep.subr.mxu1 %v384_v45 }
  0xc3   :  { %553 = vmatpush1.msra.mxu1 %v383_v44 }
  0xc4   :  { %v147_v16 = vpop.permute.xlu1 %146  ;;  %v145_v46 = vpop.permute.xlu0 %144  ;;  %1888 = vmatmul.mubr.msk.f32.vlgmr.msra.gmra.mrb[0].mxu1 %vm461_vm12, %v2301_v38 }
  0xc5   :  { %1544 = vmatprep.mubr.f32.mxu1 %v2034_v1  ;;  %v152_v49 = vsel %vm148_vm5, %v2257_v36, %v145_v46  ;;  %v153_v50 = vsel %vm148_vm5, %v145_v46, %v147_v16 }
  0xc8   :  { %v191_v47 = vpop.permute.xlu1 %190  ;;  %v189_v48 = vpop.permute.xlu0 %188 }
  0xc9   :  { %v196_v51 = vsel %vm2884_vm6, %v2259_v39, %v189_v48  ;;  %v197_v52 = vsel %vm2884_vm6, %v189_v48, %v191_v47  ;;  %vm2888_vm6 = vcmask 1048432  }
  0xca   :  { %v1929_v53 = vpack.c.bf16 %v197_v52, %v153_v50  ;;  %v1931_v54 = vpack.c.bf16 %v196_v51, %v152_v49 }
  0xcc   :  { %v291_v55 = vpop.permute.xlu1 %290  ;;  %v247_v56 = vpop.permute.xlu0 %246  ;;  %1930 = vmatprep.subr.bf16.mxu0 %v1929_v53 }
  0xcd   :  { %309 = vst.msk [vmem:[#allocation2 + $0x148] sm:$0xff] %vm292_vm9, %v291_v55  ;;  %1932 = vmatpush1.bf16.msra.mxu0 %v1931_v54  ;;  %v253_v57 = vsel %vm248_vm8, %v2272_v59, %v247_v56  ;;  %v297_v0 = vsel %vm292_vm9, %v2282_v15, %v291_v55  ;;  %v717_v59 = vlaneseq }
  0xce   :  { %265 = vst.msk [vmem:[#allocation2 + $0x118] sm:$0xff] %vm248_vm8, %v247_v56  ;;  %v1935_v61 = vpack.c.bf16 %v253_v57, %v2165_v5 }
  0xcf   :  { %311 = vst.msk [vmem:[#allocation2 + $0x148] sm:$0xff] %vm2887_vm13, %v2034_v1  ;;  %v2351_v4 = vshrl.u32 %v717_v59, 7 }
  0xd0   :  { %267 = vst.msk [vmem:[#allocation2 + $0x118] sm:$0xff] %vm266_vm14, %v2034_v1  ;;  %v379_v36 = vpop.permute.xlu1 %378  ;;  %v335_v39 = vpop.permute.xlu0 %334 }
  0xd1   :  { %397 = vst.msk [vmem:[#allocation2 + $0x1a8] sm:$0xff] %vm380_vm11, %v379_v36  ;;  %v341_v63 = vsel %vm336_vm10, %v2285_v19, %v335_v39  ;;  %v2365_v25 = vsub.s32 0, %v2351_v4  ;;  %v723_v33 = vsub.s32 1, %v2351_v4 }
  0xd2   :  { %353 = vst.msk [vmem:[#allocation2 + $0x178] sm:$0xff] %vm336_vm10, %v335_v39  ;;  %v1939_v8 = vpack.c.bf16 %v341_v63, %v297_v0 }
  0xd3   :  { %399 = vst.msk [vmem:[#allocation2 + $0x1a8] sm:$0xff] %vm2885_vm15, %v2034_v1  ;;  %v2379_v21 = vrot.slane %v2373_v29, %v2365_v25  ;;  %v2383_v48 = vrot.slane %v2373_v29, %v723_v33  ;;  %vm2886_vm15 = vcmask 1040384  }
  0xd4   :  { %355 = vst.msk [vmem:[#allocation2 + $0x178] sm:$0xff] %vm2888_vm6, %v2034_v1 }
  0xd6   :  { %v442_v62 = vld [vmem:[#allocation2 + $0x148] sm:$0xff] }
  0xd7   :  { %v436_v58 = vld [vmem:[#allocation2 + $0x118] sm:$0xff] }
  0xd8   :  { %v1933_v60 = vpack.c.bf16 %v436_v58, %v2194_v6  ;;  %v385_v6 = vsel %vm380_vm11, %v377_v42, %v379_v36  ;;  %v727_v42 = vsub.s32 2, %v2351_v4 }
  0xda   :  { %1934 = vmatprep.subr.bf16.mxu0 %v1933_v60  ;;  %v454_v9 = vld [vmem:[#allocation2 + $0x1a8] sm:$0xff]  ;;  %v2386_v55 = vrot.slane %v2373_v29, %v727_v42 }
  0xdb   :  { %1936 = vmatpush1.bf16.msra.mxu0 %v1935_v61  ;;  %v448_v2 = vld [vmem:[#allocation2 + $0x178] sm:$0xff] }
  0xdc   :  { %v1937_v7 = vpack.c.bf16 %v448_v2, %v442_v62 }
  0xde   :  { %1938 = vmatprep.subr.bf16.mxu0 %v1937_v7 }
  0xdf   :  { %1940 = vmatpush1.bf16.msra.mxu0 %v1939_v8 }
  0xe0   :  { %623 = vmatprep.subr.mxu0 %v454_v9 }
  0xe1   :  { %v2343_v5 = vpop.permute.xlu0 %458 }
  0xe3   :  { %624 = vmatpush1.msra.mxu0 %v385_v6 }
  0xe4   :  { %1889 = vmatmul.mubr.msk.f32.vlgmr.msra.gmra.mrb[2].mxu0 %vm461_vm12, %v2301_v38 }
  0xe5   :  { %1615 = vmatprep.mubr.f32.mxu0 %v2034_v1 }
 0x193   :  { %v531_v10 = vpop.f32.mrb[0].mxu0 }
 0x194   :  { %v533_v11 = vpop.f32.mrb[1].mxu0  ;;  %v2346_v12 = vadd.f32 %v531_v10, %v2343_v5 }
 0x195   :  { %v2349_v3 = vadd.f32 %v533_v11, %v2343_v5 }
 0x196   :  { %v680_v13 = vrot.slane %v2346_v12, 4  ;;  %v753_v14 = vmul.f32 %v2346_v12, %v2346_v12 }
 0x197   :  { %v602_v15 = vpop.f32.mrb[0].mxu1  ;;  %v686_v17 = vrot.slane %v2349_v3, 4  ;;  %v754_v18 = vmul.f32 %v2349_v3, %v2349_v3 }
 0x198   :  { %v2360_v19 = vadd.f32 %v602_v15, %v2343_v5  ;;  %v604_v20 = vpop.f32.mrb[1].mxu1  ;;  %v681_v22 = vadd.f32 %v680_v13, %v2346_v12  ;;  %v759_v23 = vrot.slane %v753_v14, 4 }
 0x199   :  { %v687_v24 = vadd.f32 %v686_v17, %v2349_v3  ;;  %v765_v26 = vrot.slane %v754_v18, 4  ;;  %v2390_v60 = vadd.f32 %v604_v20, %v2343_v5 }
 0x19a   :  { %v692_v27 = vrot.slane %v2360_v19, 4  ;;  %v755_v28 = vmul.f32 %v2360_v19, %v2360_v19  ;;  %v682_v30 = vrot.slane %v681_v22, 2  ;;  %v760_v31 = vadd.f32 %v759_v23, %v753_v14 }
 0x19b   :  { %v688_v32 = vrot.slane %v687_v24, 2  ;;  %v766_v34 = vadd.f32 %v765_v26, %v754_v18  ;;  %v756_v14 = vmul.f32 %v2390_v60, %v2390_v60 }
 0x19c   :  { %v693_v35 = vadd.f32 %v692_v27, %v2360_v19  ;;  %v771_v37 = vrot.slane %v755_v28, 4  ;;  %v683_v38 = vadd.f32 %v682_v30, %v681_v22  ;;  %v761_v40 = vrot.slane %v760_v31, 2 }
 0x19d   :  { %v689_v41 = vadd.f32 %v688_v32, %v687_v24  ;;  %v767_v43 = vrot.slane %v766_v34, 2  ;;  %v698_v22 = vrot.slane %v2390_v60, 4  ;;  %v777_v26 = vrot.slane %v756_v14, 4 }
 0x19e   :  { %v684_v44 = vrot.slane %v683_v38, 1  ;;  %v694_v45 = vrot.slane %v693_v35, 2  ;;  %v762_v16 = vadd.f32 %v761_v40, %v760_v31  ;;  %v772_v46 = vadd.f32 %v771_v37, %v755_v28 }
 0x19f   :  { %v690_v47 = vrot.slane %v689_v41, 1  ;;  %v768_v49 = vadd.f32 %v767_v43, %v766_v34  ;;  %v699_v27 = vadd.f32 %v698_v22, %v2390_v60  ;;  %v778_v28 = vadd.f32 %v777_v26, %v756_v14 }
 0x1a0   :  { %v685_v50 = vadd.f32 %v684_v44, %v683_v38  ;;  %v695_v51 = vadd.f32 %v694_v45, %v693_v35  ;;  %v763_v52 = vrot.slane %v762_v16, 1  ;;  %v773_v53 = vrot.slane %v772_v46, 2 }
 0x1a1   :  { %v691_v54 = vadd.f32 %v690_v47, %v689_v41  ;;  %v769_v56 = vrot.slane %v768_v49, 1  ;;  %v700_v30 = vrot.slane %v699_v27, 2  ;;  %v779_v31 = vrot.slane %v778_v28, 2 }
 0x1a2   :  { %v696_v36 = vrot.slane %v695_v51, 1  ;;  %v747_v39 = vmul.f32 %v2379_v21, %v685_v50  ;;  %v764_v57 = vadd.f32 %v763_v52, %v762_v16  ;;  %v774_v58 = vadd.f32 %v773_v53, %v772_v46 }
 0x1a3   :  { %v748_v61 = vmul.f32 %v2383_v48, %v691_v54  ;;  %v770_v62 = vadd.f32 %v769_v56, %v768_v49  ;;  %v701_v35 = vadd.f32 %v700_v30, %v699_v27  ;;  %v780_v41 = vadd.f32 %v779_v31, %v778_v28 }
 0x1a4   :  { %v697_v63 = vadd.f32 %v696_v36, %v695_v51  ;;  %v802_v2 = vsel %vm2886_vm15, %v747_v39, 0.0  ;;  %v775_v0 = vrot.slane %v774_v58, 1  ;;  %v795_v7 = vmul.f32 %v764_v57, %v2379_v21 }
 0x1a5   :  { %v803_v8 = vsel %vm2886_vm15, %v748_v61, 0.0  ;;  %v796_v9 = vmul.f32 %v770_v62, %v2383_v48  ;;  %v702_v16 = vrot.slane %v701_v35, 1  ;;  %v731_v46 = vsub.s32 3, %v2351_v4 }
 0x1a6   :  { %v749_v6 = vmul.f32 %v2386_v55, %v697_v63  ;;  %v804_v59 = vadd.f32 %v803_v8, %v802_v2  ;;  %v776_v10 = vadd.f32 %v775_v0, %v774_v58  ;;  %v818_v11 = vsel %vm2886_vm15, %v795_v7, 0.0 }
 0x1a7   :  { %v819_v13 = vsel %vm2886_vm15, %v796_v9, 0.0  ;;  %v735_v51 = vsub.s32 4, %v2351_v4  ;;  %v781_v52 = vrot.slane %v780_v41, 1  ;;  %v739_v54 = vsub.s32 5, %v2351_v4 }
 0x1a8   :  { %v805_v15 = vsel %vm2886_vm15, %v749_v6, 0.0  ;;  %v797_v17 = vmul.f32 %v776_v10, %v2386_v55  ;;  %v820_v18 = vadd.f32 %v819_v13, %v818_v11  ;;  %v703_v36 = vadd.f32 %v702_v16, %v701_v35 }
 0x1a9   :  { %v806_v20 = vadd.f32 %v805_v15, %v804_v59  ;;  %v2425_v57 = vrot.slane %v2373_v29, %v731_v46  ;;  %v2428_v2 = vrot.slane %v2373_v29, %v735_v51  ;;  %v782_v0 = vadd.f32 %v781_v52, %v780_v41 }
 0x1aa   :  { %v821_v23 = vsel %vm2886_vm15, %v797_v17, 0.0  ;;  %v2431_v9 = vrot.slane %v2373_v29, %v739_v54 }
 0x1ab   :  { %807 = vadd.xlane.f32.xlu1 %v806_v20  ;;  %v822_v24 = vadd.f32 %v821_v23, %v820_v18  ;;  %v750_v59 = vmul.f32 %v2425_v57, %v703_v36  ;;  %v798_v17 = vmul.f32 %v782_v0, %v2425_v57 }
 0x1ad   :  { %823 = vadd.xlane.f32.xlu0 %v822_v24  ;;  %v809_v22 = vsel %vm2886_vm15, %v750_v59, 0.0  ;;  %v825_v28 = vsel %vm2886_vm15, %v798_v17, 0.0 }
 0x1b7   :  { %v673_v32 = vpop.f32.mrb[2].mxu0 }
 0x1b8   :  { %v2408_v33 = vadd.f32 %v673_v32, %v2343_v5  ;;  %v675_v34 = vpop.f32.mrb[3].mxu0 }
 0x1b9   :  { %v2411_v37 = vadd.f32 %v675_v34, %v2343_v5 }
 0x1ba   :  { %v704_v38 = vrot.slane %v2408_v33, 4  ;;  %v757_v40 = vmul.f32 %v2408_v33, %v2408_v33 }
 0x1bb   :  { %v710_v42 = vrot.slane %v2411_v37, 4  ;;  %v758_v43 = vmul.f32 %v2411_v37, %v2411_v37 }
 0x1bc   :  { %v705_v44 = vadd.f32 %v704_v38, %v2408_v33  ;;  %v783_v45 = vrot.slane %v757_v40, 4  ;;  %v678_v38 = vld [vmem:[%s2877_s3] sm:$0xff] }
 0x1bd   :  { %v711_v5 = vadd.f32 %v710_v42, %v2411_v37  ;;  %v789_v47 = vrot.slane %v758_v43, 4 }
 0x1be   :  { %v706_v49 = vrot.slane %v705_v44, 2  ;;  %v784_v50 = vadd.f32 %v783_v45, %v757_v40  ;;  %v679_v40 = vld [vmem:[%s2878_s4] sm:$0xff] }
 0x1bf   :  { %v712_v53 = vrot.slane %v711_v5, 2  ;;  %v790_v56 = vadd.f32 %v789_v47, %v758_v43 }
 0x1c0   :  { %v707_v39 = vadd.f32 %v706_v49, %v705_v44  ;;  %v785_v58 = vrot.slane %v784_v50, 2 }
 0x1c1   :  { %v713_v61 = vadd.f32 %v712_v53, %v711_v5  ;;  %v791_v62 = vrot.slane %v790_v56, 2 }
 0x1c2   :  { %v708_v63 = vrot.slane %v707_v39, 1  ;;  %v786_v7 = vadd.f32 %v785_v58, %v784_v50 }
 0x1c3   :  { %v714_v8 = vrot.slane %v713_v61, 1  ;;  %v792_v4 = vadd.f32 %v791_v62, %v790_v56 }
 0x1c4   :  { %v709_v6 = vadd.f32 %v708_v63, %v707_v39  ;;  %v787_v10 = vrot.slane %v786_v7, 1 }
 0x1c5   :  { %v715_v11 = vadd.f32 %v714_v8, %v713_v61  ;;  %v793_v13 = vrot.slane %v792_v4, 1 }
 0x1c6   :  { %v751_v14 = vmul.f32 %v2428_v2, %v709_v6  ;;  %v788_v15 = vadd.f32 %v787_v10, %v786_v7 }
 0x1c7   :  { %v752_v18 = vmul.f32 %v2431_v9, %v715_v11  ;;  %v794_v20 = vadd.f32 %v793_v13, %v792_v4 }
 0x1c8   :  { %v810_v29 = vsel %vm2886_vm15, %v751_v14, 0.0  ;;  %v799_v23 = vmul.f32 %v788_v15, %v2428_v2 }
 0x1c9   :  { %v811_v24 = vadd.f32 %v810_v29, %v809_v22  ;;  %v812_v26 = vsel %vm2886_vm15, %v752_v18, 0.0  ;;  %v800_v27 = vmul.f32 %v794_v20, %v2431_v9 }
 0x1ca   :  { %v826_v30 = vsel %vm2886_vm15, %v799_v23, 0.0 }
 0x1cb   :  { %v813_v31 = vadd.f32 %v812_v26, %v811_v24  ;;  %v827_v32 = vadd.f32 %v826_v30, %v825_v28  ;;  %v828_v34 = vsel %vm2886_vm15, %v800_v27, 0.0 }
 0x1cd   :  { %814 = vadd.xlane.f32.xlu1 %v813_v31  ;;  %v829_v35 = vadd.f32 %v828_v34, %v827_v32 }
 0x1cf   :  { %830 = vadd.xlane.f32.xlu0 %v829_v35 }
 0x1de   :  { %874 = vperm.xlu1 %2001, %v678_v38  }
 0x1e5   :  { %885 = vperm.xlu0 %2000, %v679_v40  }
 0x238   :  { %v808_v41 = vpop.xlane.xlu1 %807 }
 0x239   :  { %v816_v42 = vmul.f32 0.00048828125, %v808_v41 }
 0x23a   :  { %v824_v43 = vpop.xlane.xlu0 %823 }
 0x23b   :  { %v834_v44 = vmul.f32 %v816_v42, %v816_v42  ;;  %v832_v45 = vmul.f32 0.00048828125, %v824_v43  ;;  %v847_v50 = vrot.slane %v816_v42, %v2365_v25 }
 0x23d   :  { %v836_v16 = vsub.f32 %v832_v45, %v834_v44  ;;  %v852_v36 = vsub.f32 %v2346_v12, %v847_v50  ;;  %v853_v39 = vsub.f32 %v2349_v3, %v847_v50  ;;  %v854_v58 = vsub.f32 %v2360_v19, %v847_v50 }
 0x23f   :  { %v838_v46 = vmax.f32 %v836_v16, 0.0 }
 0x241   :  { %v840_v5 = vadd.f32 1e-05, %v838_v46 }
 0x243   :  { %2002 = vrsqrt.f32 %v840_v5 }
 0x24d   :  { %v2003_v47 = vpop.eup %2002 }
 0x24e   :  { %v861_v53 = vrot.slane %v2003_v47, %v2365_v25 }
 0x250   :  { %v866_v0 = vmul.f32 %v861_v53, %v852_v36  ;;  %v867_v7 = vmul.f32 %v861_v53, %v853_v39  ;;  %v868_v8 = vmul.f32 %v861_v53, %v854_v58 }
 0x25a   :  { %v815_v49 = vpop.xlane.xlu1 %814 }
 0x25b   :  { %v817_v51 = vmul.f32 0.00048828125, %v815_v49 }
 0x25c   :  { %v831_v52 = vpop.xlane.xlu0 %830 }
 0x25d   :  { %v835_v54 = vmul.f32 %v817_v51, %v817_v51  ;;  %v833_v56 = vmul.f32 0.00048828125, %v831_v52  ;;  %v851_v20 = vrot.slane %v817_v51, %v2365_v25 }
 0x25e   :  { %v875_v62 = vpop.permute.xlu1 %874 }
 0x25f   :  { %v837_v61 = vsub.f32 %v833_v56, %v835_v54  ;;  %v877_v6 = vmul.f32 %v875_v62, %v866_v0  ;;  %v878_v59 = vmul.f32 %v875_v62, %v867_v7  ;;  %v879_v10 = vmul.f32 %v875_v62, %v868_v8 }
 0x260   :  { %v855_v30 = vsub.f32 %v2390_v60, %v851_v20  ;;  %v856_v32 = vsub.f32 %v2408_v33, %v851_v20  ;;  %v857_v34 = vsub.f32 %v2411_v37, %v851_v20 }
 0x261   :  { %v839_v63 = vmax.f32 %v837_v61, 0.0 }
 0x263   :  { %v841_v4 = vadd.f32 1e-05, %v839_v63 }
 0x264   :  { %v886_v11 = vpop.permute.xlu0 %885 }
 0x265   :  { %2004 = vrsqrt.f32 %v841_v4  ;;  %v2456_v13 = vadd.f32 %v886_v11, %v877_v6  ;;  %v2458_v14 = vadd.f32 %v886_v11, %v878_v59  ;;  %v2460_v12 = vadd.f32 %v886_v11, %v879_v10 }
 0x267   :  { %v2463_v3 = vmul.f32 0.70710677, %v2456_v13  ;;  %v2466_v19 = vmul.f32 0.70710677, %v2458_v14  ;;  %v2469_v15 = vmul.f32 0.70710677, %v2460_v12 }
 0x269   :  { %v918_v17 = vand.u32 2147483647, %v2463_v3  ;;  %v919_v18 = vand.u32 2147483647, %v2466_v19  ;;  %v920_v22 = vand.u32 2147483647, %v2469_v15 }
 0x26a   :  { %vm906_vm15 = vcmp.lt.f32.partialorder %v2463_v3, 0.0  ;;  %vm907_vm13 = vcmp.lt.f32.partialorder %v2466_v19, 0.0  ;;  %vm908_vm6 = vcmp.lt.f32.partialorder %v2469_v15, 0.0  ;;  %v2044_v3 = vmov 1.0  }
 0x26b   :  { %v924_v29 = vmul.f32 0.3275911, %v918_v17  ;;  %v925_v23 = vmul.f32 0.3275911, %v919_v18  ;;  %v926_v24 = vmul.f32 0.3275911, %v920_v22 }
 0x26c   :  { %v1002_v42 = vsub.f32 0.0, %v918_v17  ;;  %v1003_v16 = vsub.f32 0.0, %v919_v18  ;;  %v1004_v47 = vsub.f32 0.0, %v920_v22  ;;  %v914_v19 = vsel %vm908_vm6, -1.0, %v2044_v3 }
 0x26d   :  { %v930_v26 = vadd.f32 1.0, %v924_v29  ;;  %v931_v27 = vadd.f32 1.0, %v925_v23  ;;  %v932_v31 = vadd.f32 1.0, %v926_v24 }
 0x26e   :  { %v1008_v33 = vmul.f32 %v1002_v42, %v918_v17  ;;  %v1009_v49 = vmul.f32 %v1003_v16, %v919_v18  ;;  %v1010_v63 = vmul.f32 %v1004_v47, %v920_v22  ;;  %v2514_v42 = vmul.f32 0.5, %v2456_v13 }
 0x26f   :  { %v2005_v28 = vpop.eup %2004  ;;  %2006 = vrcp.f32 %v930_v26  ;;  %v912_v13 = vsel %vm906_vm15, -1.0, %v2044_v3 }
 0x270   :  { %v865_v35 = vrot.slane %v2005_v28, %v2365_v25  ;;  %2008 = vrcp.f32 %v931_v27  ;;  %v1014_v58 = vmul.f32 1.442695, %v1008_v33  ;;  %v1016_v0 = vmul.f32 1.442695, %v1009_v49 }
 0x271   :  { %2010 = vrcp.f32 %v932_v31  ;;  %v1018_v23 = vmul.f32 1.442695, %v1010_v63  ;;  %v895_v33 = vmul.f32 0.5, %v2458_v14 }
 0x272   :  { %v869_v38 = vmul.f32 %v865_v35, %v855_v30  ;;  %v870_v40 = vmul.f32 %v865_v35, %v856_v32  ;;  %v871_v41 = vmul.f32 %v865_v35, %v857_v34  ;;  %2012 = vpow2.f32 %v1014_v58 }
 0x274   :  { %v880_v43 = vmul.f32 %v875_v62, %v869_v38  ;;  %v881_v44 = vmul.f32 %v875_v62, %v870_v40  ;;  %v882_v45 = vmul.f32 %v875_v62, %v871_v41 }
 0x276   :  { %v2479_v46 = vadd.f32 %v886_v11, %v880_v43  ;;  %v2481_v60 = vadd.f32 %v886_v11, %v881_v44  ;;  %v2483_v5 = vadd.f32 %v886_v11, %v882_v45 }
 0x278   :  { %v2486_v37 = vmul.f32 0.70710677, %v2479_v46  ;;  %v2491_v51 = vmul.f32 0.70710677, %v2481_v60  ;;  %v2494_v52 = vmul.f32 0.70710677, %v2483_v5 }
 0x279   :  { %v2488_v50 = vpop.eup %2006 }
 0x27a   :  { %v2496_v53 = vpop.eup %2008  ;;  %v921_v54 = vand.u32 2147483647, %v2486_v37  ;;  %v948_v56 = vmul.f32 1.0614054, %v2488_v50  ;;  %v922_v39 = vand.u32 2147483647, %v2491_v51 }
 0x27b   :  { %v2500_v36 = vpop.eup %2010  ;;  %v923_v61 = vand.u32 2147483647, %v2494_v52  ;;  %v949_v8 = vmul.f32 1.0614054, %v2496_v53  ;;  %vm909_vm6 = vcmp.lt.f32.partialorder %v2486_v37, 0.0  ;;  %vm911_vm15 = vcmp.lt.f32.partialorder %v2494_v52, 0.0 }
 0x27c   :  { %v927_v62 = vmul.f32 0.3275911, %v921_v54  ;;  %v928_v7 = vmul.f32 0.3275911, %v922_v39  ;;  %v950_v4 = vmul.f32 1.0614054, %v2500_v36  ;;  %v2013_v16 = vpop.eup %2012 }
 0x27d   :  { %v929_v6 = vmul.f32 0.3275911, %v923_v61  ;;  %v954_v10 = vadd.f32 -1.4531521, %v948_v56  ;;  %v955_v17 = vadd.f32 -1.4531521, %v949_v8 }
 0x27e   :  { %v933_v59 = vadd.f32 1.0, %v927_v62  ;;  %v934_v11 = vadd.f32 1.0, %v928_v7  ;;  %v956_v18 = vadd.f32 -1.4531521, %v950_v4  ;;  %v1005_v31 = vsub.f32 0.0, %v921_v54 }
 0x27f   :  { %v935_v20 = vadd.f32 1.0, %v929_v6  ;;  %v960_v29 = vmul.f32 %v2488_v50, %v954_v10  ;;  %v961_v22 = vmul.f32 %v2496_v53, %v955_v17  ;;  %v1006_v38 = vsub.f32 0.0, %v922_v39 }
 0x280   :  { %2014 = vrcp.f32 %v933_v59  ;;  %v962_v24 = vmul.f32 %v2500_v36, %v956_v18  ;;  %v1007_v44 = vsub.f32 0.0, %v923_v61  ;;  %v1011_v45 = vmul.f32 %v1005_v31, %v921_v54 }
 0x281   :  { %2016 = vrcp.f32 %v934_v11  ;;  %v966_v26 = vadd.f32 1.4214138, %v960_v29  ;;  %v967_v27 = vadd.f32 1.4214138, %v961_v22  ;;  %v1012_v62 = vmul.f32 %v1006_v38, %v922_v39 }
 0x282   :  { %2018 = vrcp.f32 %v935_v20  ;;  %v968_v28 = vadd.f32 1.4214138, %v962_v24  ;;  %v1013_v6 = vmul.f32 %v1007_v44, %v923_v61  ;;  %v1020_v59 = vmul.f32 1.442695, %v1011_v45 }
 0x283   :  { %2020 = vpow2.f32 %v1016_v0  ;;  %v972_v30 = vmul.f32 %v2488_v50, %v966_v26  ;;  %v973_v32 = vmul.f32 %v2496_v53, %v967_v27  ;;  %v913_v29 = vsel %vm907_vm13, -1.0, %v2044_v3 }
 0x284   :  { %2022 = vpow2.f32 %v1018_v23  ;;  %v974_v34 = vmul.f32 %v2500_v36, %v968_v28  ;;  %v1022_v22 = vmul.f32 1.442695, %v1012_v62  ;;  %v896_v45 = vmul.f32 0.5, %v2460_v12 }
 0x285   :  { %v978_v35 = vadd.f32 -0.28449672, %v972_v30  ;;  %v979_v40 = vadd.f32 -0.28449672, %v973_v32  ;;  %2024 = vpow2.f32 %v1020_v59  ;;  %v1024_v30 = vmul.f32 1.442695, %v1013_v6 }
 0x286   :  { %v980_v41 = vadd.f32 -0.28449672, %v974_v34  ;;  %2026 = vpow2.f32 %v1022_v22  ;;  %vm910_vm13 = vcmp.lt.f32.partialorder %v2491_v51, 0.0  ;;  %v917_v51 = vsel %vm911_vm15, -1.0, %v2044_v3 }
 0x287   :  { %v984_v43 = vmul.f32 %v2488_v50, %v978_v35  ;;  %v985_v47 = vmul.f32 %v2496_v53, %v979_v40  ;;  %2028 = vpow2.f32 %v1024_v30  ;;  %v897_v52 = vmul.f32 0.5, %v2479_v46 }
 0x288   :  { %v986_v49 = vmul.f32 %v2500_v36, %v980_v41 }
 0x289   :  { %v990_v58 = vadd.f32 0.2548296, %v984_v43  ;;  %v991_v14 = vadd.f32 0.2548296, %v985_v47 }
 0x28a   :  { %v2521_v56 = vpop.eup %2014  ;;  %v992_v0 = vadd.f32 0.2548296, %v986_v49 }
 0x28b   :  { %v2525_v63 = vpop.eup %2016  ;;  %v951_v54 = vmul.f32 1.0614054, %v2521_v56  ;;  %v996_v4 = vmul.f32 %v2488_v50, %v990_v58  ;;  %v997_v39 = vmul.f32 %v2496_v53, %v991_v14 }
 0x28c   :  { %v2528_v7 = vpop.eup %2018  ;;  %v952_v8 = vmul.f32 1.0614054, %v2525_v63  ;;  %v998_v18 = vmul.f32 %v2500_v36, %v992_v0 }
 0x28d   :  { %v2021_v10 = vpop.eup %2020  ;;  %v953_v11 = vmul.f32 1.0614054, %v2528_v7  ;;  %v957_v17 = vadd.f32 -1.4531521, %v951_v54  ;;  %v1026_v24 = vmul.f32 %v2013_v16, %v996_v4 }
 0x28e   :  { %v2023_v20 = vpop.eup %2022  ;;  %v958_v23 = vadd.f32 -1.4531521, %v952_v8  ;;  %v1027_v61 = vmul.f32 %v2021_v10, %v997_v39 }
 0x28f   :  { %v959_v26 = vadd.f32 -1.4531521, %v953_v11  ;;  %v963_v50 = vmul.f32 %v2521_v56, %v957_v17  ;;  %v1028_v27 = vmul.f32 %v2023_v20, %v998_v18  ;;  %v1032_v53 = vsub.f32 1.0, %v1026_v24 }
 0x290   :  { %v964_v28 = vmul.f32 %v2525_v63, %v958_v23  ;;  %v1033_v32 = vsub.f32 1.0, %v1027_v61 }
 0x291   :  { %v965_v36 = vmul.f32 %v2528_v7, %v959_v26  ;;  %v969_v31 = vadd.f32 1.4214138, %v963_v50  ;;  %v1034_v34 = vsub.f32 1.0, %v1028_v27  ;;  %v1038_v38 = vmul.f32 %v1032_v53, %v912_v13 }
 0x292   :  { %v970_v35 = vadd.f32 1.4214138, %v964_v28  ;;  %v1039_v43 = vmul.f32 %v1033_v32, %v913_v29  ;;  %v899_v32 = vmul.f32 0.5, %v2483_v5  ;;  %v1471_v5 = vld [vmem:[%s2879_s6] sm:$0xff] }
 0x293   :  { %v971_v40 = vadd.f32 1.4214138, %v965_v36  ;;  %v975_v41 = vmul.f32 %v2521_v56, %v969_v31  ;;  %v1040_v44 = vmul.f32 %v1034_v34, %v914_v19  ;;  %v1044_v47 = vadd.f32 1.0, %v1038_v38 }
 0x294   :  { %v976_v16 = vmul.f32 %v2525_v63, %v970_v35  ;;  %v1045_v62 = vadd.f32 1.0, %v1039_v43  ;;  %v898_v36 = vmul.f32 0.5, %v2481_v60 }
 0x295   :  { %v977_v49 = vmul.f32 %v2528_v7, %v971_v40  ;;  %v981_v58 = vadd.f32 -0.28449672, %v975_v41  ;;  %v1046_v15 = vadd.f32 1.0, %v1040_v44  ;;  %v1050_v14 = vmul.f32 %v1044_v47, %v2514_v42  ;;  %v2025_v42 = vpop.eup %2024 }
 0x296   :  { %v982_v54 = vadd.f32 -0.28449672, %v976_v16  ;;  %v1051_v8 = vmul.f32 %v1045_v62, %v895_v33  ;;  %v2027_v20 = vpop.eup %2026 }
 0x297   :  { %v983_v13 = vadd.f32 -0.28449672, %v977_v49  ;;  %v987_v0 = vmul.f32 %v2521_v56, %v981_v58  ;;  %v1052_v4 = vmul.f32 %v1046_v15, %v896_v45  ;;  %v2552_v12 = vmul.f32 %v1050_v14, %v2379_v21  ;;  %v2029_v24 = vpop.eup %2028 }
 0x298   :  { %v988_v6 = vmul.f32 %v2525_v63, %v982_v54  ;;  %v2556_v11 = vmul.f32 %v1051_v8, %v2383_v48 }
 0x299   :  { %v989_v59 = vmul.f32 %v2528_v7, %v983_v13  ;;  %v993_v10 = vadd.f32 0.2548296, %v987_v0  ;;  %v2559_v17 = vmul.f32 %v1052_v4, %v2386_v55  ;;  %1122 = vrot.lane.b32.xlu0 %v2552_v12, %s2035_s15  ;;  %1080 = vrot.lane.b32.xlu1 %v2552_v12, %s2036_s16 }
 0x29a   :  { %v994_v39 = vadd.f32 0.2548296, %v988_v6 }
 0x29b   :  { %v995_v33 = vadd.f32 0.2548296, %v989_v59  ;;  %v999_v18 = vmul.f32 %v2521_v56, %v993_v10 }
 0x29c   :  { %v1000_v29 = vmul.f32 %v2525_v63, %v994_v39  ;;  %v915_v63 = vsel %vm909_vm6, -1.0, %v2044_v3 }
 0x29d   :  { %v1001_v23 = vmul.f32 %v2528_v7, %v995_v33  ;;  %v1029_v22 = vmul.f32 %v2025_v42, %v999_v18  ;;  %1164 = vrot.lane.b32.xlu0 %v2552_v12, %s2037_s23  ;;  %1082 = vrot.lane.b32.xlu1 %v2556_v11, %s2036_s16  ;;  %v916_v7 = vsel %vm910_vm13, -1.0, %v2044_v3 }
 0x29e   :  { %v1030_v26 = vmul.f32 %v2027_v20, %v1000_v29 }
 0x29f   :  { %v1031_v56 = vmul.f32 %v2029_v24, %v1001_v23  ;;  %v1035_v50 = vsub.f32 1.0, %v1029_v22 }
 0x2a0   :  { %v1036_v37 = vsub.f32 1.0, %v1030_v26 }
 0x2a1   :  { %v1037_v61 = vsub.f32 1.0, %v1031_v56  ;;  %v1041_v27 = vmul.f32 %v1035_v50, %v915_v63  ;;  %1206 = vrot.lane.b32.xlu0 %v2552_v12, %s2038_s24  ;;  %1124 = vrot.lane.b32.xlu1 %v2556_v11, %s2035_s15 }
 0x2a2   :  { %v1042_v28 = vmul.f32 %v1036_v37, %v916_v7 }
 0x2a3   :  { %v1043_v30 = vmul.f32 %v1037_v61, %v917_v51  ;;  %v1047_v53 = vadd.f32 1.0, %v1041_v27 }
 0x2a4   :  { %v1048_v31 = vadd.f32 1.0, %v1042_v28 }
 0x2a5   :  { %v1049_v34 = vadd.f32 1.0, %v1043_v30  ;;  %v1053_v19 = vmul.f32 %v1047_v53, %v897_v52  ;;  %1262 = vrot.lane.b32.xlu0 %v2556_v11, %s2039_s25  ;;  %1166 = vrot.lane.b32.xlu1 %v2556_v11, %s2037_s23 }
 0x2a6   :  { %v1054_v35 = vmul.f32 %v1048_v31, %v898_v36 }
 0x2a7   :  { %v1055_v3 = vmul.f32 %v1049_v34, %v899_v32  ;;  %v2590_v38 = vmul.f32 %v1053_v19, %v2425_v57 }
 0x2a8   :  { %v2593_v46 = vmul.f32 %v1054_v35, %v2428_v2 }
 0x2a9   :  { %v2596_v60 = vmul.f32 %v1055_v3, %v2431_v9  ;;  %1260 = vrot.lane.b32.xlu0 %v2552_v12, %s2039_s25  ;;  %1208 = vrot.lane.b32.xlu1 %v2556_v11, %s2038_s24 }
 0x2ad   :  { %1306 = vrot.lane.b32.xlu0 %v2559_v17, %s2040_s28  ;;  %1264 = vrot.lane.b32.xlu1 %v2559_v17, %s2039_s25 }
 0x2b1   :  { %1348 = vrot.lane.b32.xlu0 %v2559_v17, %s2041_s29  ;;  %1304 = vrot.lane.b32.xlu1 %v2556_v11, %s2040_s28 }
 0x2b5   :  { %1344 = vrot.lane.b32.xlu0 %v2552_v12, %s2041_s29  ;;  %1346 = vrot.lane.b32.xlu1 %v2556_v11, %s2041_s29 }
 0x2b9   :  { %1390 = vrot.lane.b32.xlu0 %v2559_v17, %s2042_s12  ;;  %1302 = vrot.lane.b32.xlu1 %v2552_v12, %s2040_s28 }
 0x2bd   :  { %1168 = vrot.lane.b32.xlu0 %v2559_v17, %s2037_s23  ;;  %1084 = vrot.lane.b32.xlu1 %v2559_v17, %s2036_s16 }
 0x2c1   :  { %1210 = vrot.lane.b32.xlu0 %v2559_v17, %s2038_s24  ;;  %1126 = vrot.lane.b32.xlu1 %v2559_v17, %s2035_s15 }
 0x2c5   :  { %1086 = vrot.lane.b32.xlu0 %v2590_v38, %s2036_s16  ;;  %1388 = vrot.lane.b32.xlu1 %v2556_v11, %s2042_s12 }
 0x2c9   :  { %1128 = vrot.lane.b32.xlu0 %v2590_v38, %s2035_s15  ;;  %1386 = vrot.lane.b32.xlu1 %v2552_v12, %s2042_s12 }
 0x2cd   :  { %1090 = vrot.lane.b32.xlu0 %v2596_v60, %s2036_s16  ;;  %1088 = vrot.lane.b32.xlu1 %v2593_v46, %s2036_s16 }
 0x2d1   :  { %1132 = vrot.lane.b32.xlu0 %v2596_v60, %s2035_s15  ;;  %1130 = vrot.lane.b32.xlu1 %v2593_v46, %s2035_s15 }
 0x2d5   :  { %1172 = vrot.lane.b32.xlu0 %v2593_v46, %s2037_s23  ;;  %1170 = vrot.lane.b32.xlu1 %v2590_v38, %s2037_s23 }
 0x2d9   :  { %1214 = vrot.lane.b32.xlu0 %v2593_v46, %s2038_s24  ;;  %1212 = vrot.lane.b32.xlu1 %v2590_v38, %s2038_s24 }
 0x2dd   :  { %1266 = vrot.lane.b32.xlu0 %v2590_v38, %s2039_s25  ;;  %1174 = vrot.lane.b32.xlu1 %v2596_v60, %s2037_s23 }
 0x2e1   :  { %1270 = vrot.lane.b32.xlu0 %v2596_v60, %s2039_s25  ;;  %1216 = vrot.lane.b32.xlu1 %v2596_v60, %s2038_s24 }
 0x2e5   :  { %1310 = vrot.lane.b32.xlu0 %v2593_v46, %s2040_s28  ;;  %1268 = vrot.lane.b32.xlu1 %v2593_v46, %s2039_s25 }
 0x2e9   :  { %1352 = vrot.lane.b32.xlu0 %v2593_v46, %s2041_s29  ;;  %1308 = vrot.lane.b32.xlu1 %v2590_v38, %s2040_s28 }
 0x2ed   :  { %1354 = vrot.lane.b32.xlu0 %v2596_v60, %s2041_s29  ;;  %1350 = vrot.lane.b32.xlu1 %v2590_v38, %s2041_s29 }
 0x2f1   :  { %1394 = vrot.lane.b32.xlu0 %v2593_v46, %s2042_s12  ;;  %1312 = vrot.lane.b32.xlu1 %v2596_v60, %s2040_s28 }
 0x2f5   :  { %1474 = vperm.xlu0 %2000, %v1471_v5   ;;  %1392 = vrot.lane.b32.xlu1 %v2590_v38, %s2042_s12 }
 0x2f9   :  { %1396 = vrot.lane.b32.xlu1 %v2596_v60, %s2042_s12 }
 0x30b   :  { %v1123_v40 = vpop.permute.xlu0 %1122  ;;  %v1081_v41 = vpop.permute.xlu1 %1080 }
 0x30c   :  { %1145 = vst.msk [vmem:[#allocation2 + $0x30] sm:$0xff] %vm116_vm0, %v1123_v40  ;;  %vm2889_vm0 = vcmask 7168  }
 0x30d   :  { %1103 = vst.msk [vmem:[#allocation2] sm:$0xff] %vm72_vm1, %v1081_v41  ;;  %vm2890_vm1 = vmmov %vm2889_vm0 }
 0x30e   :  { %1151 = vst.msk [vmem:[#allocation2 + $0x30] sm:$0xff] %vm104_vm2, %v2034_v1 }
 0x30f   :  { %1109 = vst.msk [vmem:[#allocation2] sm:$0xff] %vm60_vm3, %v2034_v1  ;;  %v1165_v43 = vpop.permute.xlu0 %1164  ;;  %v1083_v44 = vpop.permute.xlu1 %1082 }
 0x310   :  { %1187 = vst.msk [vmem:[#allocation2 + $0x60] sm:$0xff] %vm160_vm4, %v1165_v43  ;;  %v1092_v45 = vsel %vm60_vm3, %v1081_v41, %v1083_v44  ;;  %vm2891_vm4 = vmmov %vm2889_vm0 }
 0x311   :  { %1193 = vst.msk [vmem:[#allocation2 + $0x60] sm:$0xff] %vm148_vm5, %v2034_v1 }
 0x313   :  { %v1207_v16 = vpop.permute.xlu0 %1206  ;;  %v1125_v47 = vpop.permute.xlu1 %1124 }
 0x314   :  { %1229 = vst.msk [vmem:[#allocation2 + $0x90] sm:$0xff] %vm204_vm7, %v1207_v16  ;;  %v1134_v49 = vsel %vm104_vm2, %v1123_v40, %v1125_v47  ;;  %vm2893_vm7 = vmmov %vm2889_vm0 }
 0x315   :  { %v1423_v62 = vld [vmem:[#allocation2 + $0x30] sm:$0xff]  ;;  %1235 = vst.msk [vmem:[#allocation2 + $0x90] sm:$0xff] %vm2889_vm0, %v2034_v1  ;;  %v1941_v15 = vpack.c.bf16 %v1134_v49, %v1092_v45 }
 0x316   :  { %v1417_v58 = vld [vmem:[#allocation2] sm:$0xff] }
 0x317   :  { %v1943_v54 = vpack.c.bf16 %v1423_v62, %v1417_v58  ;;  %v1263_v14 = vpop.permute.xlu0 %1262  ;;  %v1167_v13 = vpop.permute.xlu1 %1166  ;;  %1942 = vmatprep.subr.bf16.mxu1 %v1941_v15 }
 0x318   :  { %v1176_v0 = vsel %vm148_vm5, %v1165_v43, %v1167_v13  ;;  %v1429_v8 = vld [vmem:[#allocation2 + $0x60] sm:$0xff] }
 0x319   :  { %1944 = vmatpush1.bf16.msra.mxu1 %v1943_v54  ;;  %v2726_v43 = vld [vmem:[%s2880_s5] sm:$0xff] }
 0x31b   :  { %v1261_v4 = vpop.permute.xlu0 %1260  ;;  %v1209_v6 = vpop.permute.xlu1 %1208 }
 0x31c   :  { %v1272_v59 = vsel %vm248_vm8, %v1261_v4, %v1263_v14  ;;  %v1218_v10 = vsel %vm2890_vm1, %v1207_v16, %v1209_v6  ;;  %v1435_v42 = vld [vmem:[#allocation2 + $0x90] sm:$0xff] }
 0x31d   :  { %v1945_v39 = vpack.c.bf16 %v1218_v10, %v1176_v0  ;;  %v1947_v33 = vpack.c.bf16 %v1435_v42, %v1429_v8  ;;  %v1951_v22 = vpack.c.bf16 %v1272_v59, %v2552_v12 }
 0x31f   :  { %v2698_v18 = vpop.permute.xlu0 %1306  ;;  %v2700_v20 = vpop.permute.xlu1 %1264  ;;  %1946 = vmatprep.subr.bf16.mxu1 %v1945_v39 }
 0x320   :  { %v1273_v29 = vsel %vm248_vm8, %v1263_v14, %v2700_v20  ;;  %1948 = vmatpush1.bf16.msra.mxu1 %v1947_v33 }
 0x321   :  { %v1949_v23 = vpack.c.bf16 %v1273_v29, %v2556_v11 }
 0x323   :  { %v2706_v24 = vpop.permute.xlu0 %1348  ;;  %v1305_v26 = vpop.permute.xlu1 %1304  ;;  %1950 = vmatprep.subr.bf16.mxu1 %v1949_v23 }
 0x324   :  { %v1315_v56 = vsel %vm292_vm9, %v1305_v26, %v2698_v18  ;;  %1952 = vmatpush1.bf16.msra.mxu1 %v1951_v22 }
 0x327   :  { %v1345_v50 = vpop.permute.xlu0 %1344  ;;  %v1347_v63 = vpop.permute.xlu1 %1346 }
 0x328   :  { %v1356_v37 = vsel %vm336_vm10, %v1345_v50, %v1347_v63  ;;  %v1357_v7 = vsel %vm336_vm10, %v1347_v63, %v2706_v24 }
 0x329   :  { %v1953_v61 = vpack.c.bf16 %v1357_v7, %v1315_v56 }
 0x32b   :  { %v2713_v27 = vpop.permute.xlu0 %1390  ;;  %v1303_v11 = vpop.permute.xlu1 %1302  ;;  %1954 = vmatprep.subr.bf16.mxu1 %v1953_v61 }
 0x32c   :  { %v1314_v12 = vsel %vm292_vm9, %v1303_v11, %v1305_v26 }
 0x32d   :  { %v1955_v51 = vpack.c.bf16 %v1356_v37, %v1314_v12 }
 0x32f   :  { %v1169_v28 = vpop.permute.xlu0 %1168  ;;  %v1085_v52 = vpop.permute.xlu1 %1084  ;;  %1956 = vmatpush1.bf16.msra.mxu1 %v1955_v51 }
 0x330   :  { %v1177_v30 = vsel %vm148_vm5, %v1167_v13, %v1169_v28  ;;  %v1093_v53 = vsel %vm60_vm3, %v1083_v44, %v1085_v52 }
 0x333   :  { %v1211_v36 = vpop.permute.xlu0 %1210  ;;  %v1127_v31 = vpop.permute.xlu1 %1126 }
 0x334   :  { %v1219_v32 = vsel %vm2891_vm4, %v1209_v6, %v1211_v36  ;;  %v1135_v34 = vsel %vm104_vm2, %v1125_v47, %v1127_v31 }
 0x335   :  { %v1959_v47 = vpack.c.bf16 %v1135_v34, %v1093_v53  ;;  %v1963_v26 = vpack.c.bf16 %v1219_v32, %v1177_v30 }
 0x337   :  { %v1087_v19 = vpop.permute.xlu0 %1086  ;;  %v1389_v35 = vpop.permute.xlu1 %1388 }
 0x338   :  { %v1094_v3 = vsel %vm60_vm3, %v1085_v52, %v1087_v19  ;;  %v1399_v5 = vsel %vm380_vm11, %v1389_v35, %v2713_v27 }
 0x339   :  { %1496 = vmatprep.subr.mxu1 %v1399_v5 }
 0x33b   :  { %v1129_v40 = vpop.permute.xlu0 %1128  ;;  %v1387_v41 = vpop.permute.xlu1 %1386 }
 0x33c   :  { %v1136_v44 = vsel %vm104_vm2, %v1127_v31, %v1129_v40  ;;  %v1398_v45 = vsel %vm380_vm11, %v1387_v41, %v1389_v35 }
 0x33d   :  { %1497 = vmatpush1.msra.mxu1 %v1398_v45  ;;  %v1957_v16 = vpack.c.bf16 %v1136_v44, %v1094_v3 }
 0x33e   :  { %1890 = vmatmul.mubr.msk.f32.vlgmr.msra.gmra.mrb[2].mxu1 %vm461_vm12, %v2726_v43 }
 0x33f   :  { %v1091_v49 = vpop.permute.xlu0 %1090  ;;  %v1089_v58 = vpop.permute.xlu1 %1088  ;;  %1958 = vmatprep.subr.bf16.mxu0 %v1957_v16  ;;  %1686 = vmatprep.mubr.f32.mxu1 %v2034_v1 }
 0x340   :  { %v1095_v62 = vsel %vm60_vm3, %v1087_v19, %v1089_v58  ;;  %v1096_v15 = vsel %vm60_vm3, %v1089_v58, %v1091_v49  ;;  %1960 = vmatpush1.bf16.msra.mxu0 %v1959_v47  ;;  %vm2892_vm3 = vmmov %vm2889_vm0 }
 0x343   :  { %v1133_v54 = vpop.permute.xlu0 %1132  ;;  %v1131_v14 = vpop.permute.xlu1 %1130 }
 0x344   :  { %v1137_v13 = vsel %vm104_vm2, %v1129_v40, %v1131_v14  ;;  %v1138_v0 = vsel %vm104_vm2, %v1131_v14, %v1133_v54  ;;  %vm2894_vm2 = vmmov %vm2889_vm0 }
 0x345   :  { %v1973_v8 = vpack.c.bf16 %v1138_v0, %v1096_v15  ;;  %v1975_v4 = vpack.c.bf16 %v1137_v13, %v1095_v62 }
 0x347   :  { %v1173_v6 = vpop.permute.xlu0 %1172  ;;  %v1171_v59 = vpop.permute.xlu1 %1170  ;;  %1974 = vmatprep.subr.bf16.mxu1 %v1973_v8 }
 0x348   :  { %v1178_v10 = vsel %vm148_vm5, %v1169_v28, %v1171_v59  ;;  %v1179_v42 = vsel %vm148_vm5, %v1171_v59, %v1173_v6  ;;  %1976 = vmatpush1.bf16.msra.mxu1 %v1975_v4 }
 0x34b   :  { %v1215_v39 = vpop.permute.xlu0 %1214  ;;  %v1213_v33 = vpop.permute.xlu1 %1212 }
 0x34c   :  { %v1220_v29 = vsel %vm2892_vm3, %v1211_v36, %v1213_v33  ;;  %v1221_v23 = vsel %vm2893_vm7, %v1213_v33, %v1215_v39 }
 0x34d   :  { %v1961_v22 = vpack.c.bf16 %v1220_v29, %v1178_v10  ;;  %v1979_v51 = vpack.c.bf16 %v1221_v23, %v1179_v42 }
 0x34f   :  { %v1267_v56 = vpop.permute.xlu0 %1266  ;;  %v1175_v50 = vpop.permute.xlu1 %1174  ;;  %1962 = vmatprep.subr.bf16.mxu0 %v1961_v22 }
 0x350   :  { %v1274_v63 = vsel %vm248_vm8, %v2700_v20, %v1267_v56  ;;  %v1180_v37 = vsel %vm148_vm5, %v1173_v6, %v1175_v50  ;;  %1964 = vmatpush1.bf16.msra.mxu0 %v1963_v26  ;;  %vm2895_vm5 = vcmask 1048432  }
 0x351   :  { %v1967_v36 = vpack.c.bf16 %v1274_v63, %v2559_v17 }
 0x353   :  { %v1271_v7 = vpop.permute.xlu0 %1270  ;;  %v1217_v61 = vpop.permute.xlu1 %1216 }
 0x354   :  { %1288 = vst.msk [vmem:[#allocation2 + $0x118] sm:$0xff] %vm248_vm8, %v1271_v7  ;;  %v1222_v11 = vsel %vm2894_vm2, %v1215_v39, %v1217_v61 }
 0x355   :  { %1289 = vst.msk [vmem:[#allocation2 + $0x118] sm:$0xff] %vm266_vm14, %v2034_v1  ;;  %v1977_v12 = vpack.c.bf16 %v1222_v11, %v1180_v37 }
 0x357   :  { %v1311_v28 = vpop.permute.xlu0 %1310  ;;  %v1269_v52 = vpop.permute.xlu1 %1268  ;;  %1978 = vmatprep.subr.bf16.mxu1 %v1977_v12 }
 0x358   :  { %v1275_v30 = vsel %vm248_vm8, %v1267_v56, %v1269_v52  ;;  %v1276_v20 = vsel %vm248_vm8, %v1269_v52, %v1271_v7  ;;  %1980 = vmatpush1.bf16.msra.mxu1 %v1979_v51  ;;  %vm2896_vm8 = vcmask 1048440  }
 0x359   :  { %v1965_v53 = vpack.c.bf16 %v1275_v30, %v2590_v38  ;;  %v1983_v5 = vpack.c.bf16 %v1276_v20, %v2593_v46 }
 0x35b   :  { %v1353_v31 = vpop.permute.xlu0 %1352  ;;  %v1309_v32 = vpop.permute.xlu1 %1308  ;;  %1966 = vmatprep.subr.bf16.mxu0 %v1965_v53 }
 0x35c   :  { %v1316_v34 = vsel %vm292_vm9, %v2698_v18, %v1309_v32  ;;  %v1317_v19 = vsel %vm292_vm9, %v1309_v32, %v1311_v28  ;;  %v1452_v35 = vld [vmem:[#allocation2 + $0x118] sm:$0xff]  ;;  %1968 = vmatpush1.bf16.msra.mxu0 %v1967_v36 }
 0x35d   :  { %v1981_v3 = vpack.c.bf16 %v1452_v35, %v2596_v60 }
 0x35f   :  { %v1355_v40 = vpop.permute.xlu0 %1354  ;;  %v1351_v41 = vpop.permute.xlu1 %1350  ;;  %1982 = vmatprep.subr.bf16.mxu1 %v1981_v3 }
 0x360   :  { %v1360_v38 = vsel %vm336_vm10, %v1353_v31, %v1355_v40  ;;  %1372 = vst.msk [vmem:[#allocation2 + $0x178] sm:$0xff] %vm336_vm10, %v1355_v40  ;;  %v1358_v17 = vsel %vm336_vm10, %v2706_v24, %v1351_v41  ;;  %v1359_v18 = vsel %vm336_vm10, %v1351_v41, %v1353_v31  ;;  %1984 = vmatpush1.bf16.msra.mxu1 %v1983_v5  ;;  %vm2898_vm10 = vcmask 1040384  }
 0x361   :  { %1373 = vst.msk [vmem:[#allocation2 + $0x178] sm:$0xff] %vm2895_vm5, %v2034_v1  ;;  %v1969_v44 = vpack.c.bf16 %v1359_v18, %v1317_v19  ;;  %v1971_v60 = vpack.c.bf16 %v1358_v17, %v1316_v34  ;;  %vm2901_vm14 = vmmov %vm2898_vm10 }
 0x362   :  { %vm2902_vm6 = vmmov %vm2898_vm10 }
 0x363   :  { %v1313_v45 = vpop.permute.xlu1 %1312  ;;  %1970 = vmatprep.subr.bf16.mxu0 %v1969_v44  ;;  %v1395_v16 = vpop.permute.xlu0 %1394  ;;  %vm2903_vm13 = vmmov %vm2902_vm6 }
 0x364   :  { %v1318_v46 = vsel %vm292_vm9, %v1311_v28, %v1313_v45  ;;  %1330 = vst.msk [vmem:[#allocation2 + $0x148] sm:$0xff] %vm292_vm9, %v1313_v45  ;;  %1972 = vmatpush1.bf16.msra.mxu0 %v1971_v60  ;;  %vm2897_vm9 = vcmask 1048424   ;;  %vm2904_vm15 = vmmov %vm2902_vm6 }
 0x365   :  { %1331 = vst.msk [vmem:[#allocation2 + $0x148] sm:$0xff] %vm2896_vm8, %v2034_v1  ;;  %v1987_v13 = vpack.c.bf16 %v1360_v38, %v1318_v46  ;;  %vm2905_vm0 = vmmov %vm2902_vm6 }
 0x366   :  { %vm2906_vm1 = vmmov %vm2905_vm0 }
 0x367   :  { %v1393_v24 = vpop.permute.xlu1 %1392  ;;  %vm2907_vm4 = vmmov %vm2905_vm0 }
 0x368   :  { %v1400_v47 = vsel %vm380_vm11, %v2713_v27, %v1393_v24  ;;  %v1401_v49 = vsel %vm380_vm11, %v1393_v24, %v1395_v16  ;;  %v1464_v58 = vld [vmem:[#allocation2 + $0x178] sm:$0xff]  ;;  %vm2908_vm3 = vmmov %vm2905_vm0 }
 0x369   :  { %1567 = vmatprep.subr.mxu0 %v1401_v49  ;;  %vm2909_vm7 = vmmov %vm2905_vm0 }
 0x36a   :  { %1568 = vmatpush1.msra.mxu0 %v1400_v47 }
 0x36b   :  { %v1397_v62 = vpop.permute.xlu1 %1396  ;;  %1891 = vmatmul.mubr.msk.f32.vlgmr.msra.gmra.mrb[4].mxu0 %vm461_vm12, %v2726_v43 }
 0x36c   :  { %v1402_v15 = vsel %vm380_vm11, %v1395_v16, %v1397_v62  ;;  %1414 = vst.msk [vmem:[#allocation2 + $0x1a8] sm:$0xff] %vm380_vm11, %v1397_v62  ;;  %v1458_v54 = vld [vmem:[#allocation2 + $0x148] sm:$0xff]  ;;  %vm2899_vm11 = vmmov %vm2898_vm10 }
 0x36d   :  { %1415 = vst.msk [vmem:[#allocation2 + $0x1a8] sm:$0xff] %vm2897_vm9, %v2034_v1  ;;  %v1985_v14 = vpack.c.bf16 %v1464_v58, %v1458_v54 }
 0x36f   :  { %1986 = vmatprep.subr.bf16.mxu1 %v1985_v14 }
 0x370   :  { %1988 = vmatpush1.bf16.msra.mxu1 %v1987_v13 }
 0x374   :  { %v1470_v27 = vld [vmem:[#allocation2 + $0x1a8] sm:$0xff]  ;;  %v1475_v4 = vpop.permute.xlu0 %1474 }
 0x375   :  { %1638 = vmatprep.subr.mxu1 %v1470_v27 }
 0x376   :  { %1639 = vmatpush1.msra.mxu1 %v1402_v15 }
 0x377   :  { %1892 = vmatmul.mubr.msk.f32.vlgmr.msra.gmra.mrb[4].mxu1 %vm461_vm12, %v2726_v43  ;;  %vm2900_vm12 = vmmov %vm2898_vm10 }
 0x411   :  { %v1546_v0 = vpop.f32.mrb[2].mxu1 }
 0x412   :  { %v1548_v8 = vpop.f32.mrb[3].mxu1  ;;  %v2779_v6 = vadd.f32 %v1546_v0, %v1475_v4 }
 0x413   :  { %v2781_v59 = vadd.f32 %v1548_v8, %v1475_v4 }
 0x414   :  { %v1695_v10 = vrot.slane %v2779_v6, 4  ;;  %v1737_v43 = vmul.f32 %v2779_v6, %v2779_v6 }
 0x415   :  { %v1701_v1 = vrot.slane %v2781_v59, 4  ;;  %v1738_v26 = vmul.f32 %v2781_v59, %v2781_v59 }
 0x416   :  { %v1696_v42 = vadd.f32 %v1695_v10, %v2779_v6  ;;  %v1743_v61 = vrot.slane %v1737_v43, 4 }
 0x417   :  { %v1702_v39 = vadd.f32 %v1701_v1, %v2781_v59  ;;  %v1749_v11 = vrot.slane %v1738_v26, 4 }
 0x418   :  { %v1697_v33 = vrot.slane %v1696_v42, 2  ;;  %v1744_v32 = vadd.f32 %v1743_v61, %v1737_v43 }
 0x419   :  { %v1703_v29 = vrot.slane %v1702_v39, 2  ;;  %v1750_v34 = vadd.f32 %v1749_v11, %v1738_v26 }
 0x41a   :  { %v1698_v23 = vadd.f32 %v1697_v33, %v1696_v42  ;;  %v1745_v44 = vrot.slane %v1744_v32, 2 }
 0x41b   :  { %v1704_v22 = vadd.f32 %v1703_v29, %v1702_v39  ;;  %v1751_v60 = vrot.slane %v1750_v34, 2 }
 0x41c   :  { %v1699_v56 = vrot.slane %v1698_v23, 1  ;;  %v1746_v14 = vadd.f32 %v1745_v44, %v1744_v32 }
 0x41d   :  { %v1705_v63 = vrot.slane %v1704_v22, 1  ;;  %v1752_v13 = vadd.f32 %v1751_v60, %v1750_v34 }
 0x41e   :  { %v1700_v20 = vadd.f32 %v1699_v56, %v1698_v23 }
 0x41f   :  { %v1706_v31 = vadd.f32 %v1705_v63, %v1704_v22  ;;  %v1747_v63 = vrot.slane %v1746_v14, 1 }
 0x420   :  { %v1731_v41 = vmul.f32 %v1700_v20, %v2379_v21 }
 0x421   :  { %v1732_v18 = vmul.f32 %v1706_v31, %v2383_v48  ;;  %v1748_v34 = vadd.f32 %v1747_v63, %v1746_v14 }
 0x422   :  { %v1785_v47 = vsel %vm2898_vm10, %v1731_v41, 0.0 }
 0x423   :  { %v1786_v54 = vsel %vm2899_vm11, %v1732_v18, 0.0 }
 0x424   :  { %v1787_v33 = vadd.f32 %v1786_v54, %v1785_v47 }
 0x43e   :  { %v1617_v50 = vpop.f32.mrb[4].mxu0 }
 0x43f   :  { %v2791_v37 = vadd.f32 %v1617_v50, %v1475_v4  ;;  %v1619_v7 = vpop.f32.mrb[5].mxu0 }
 0x440   :  { %v2793_v12 = vadd.f32 %v1619_v7, %v1475_v4 }
 0x441   :  { %v1707_v51 = vrot.slane %v2791_v37, 4  ;;  %v1739_v28 = vmul.f32 %v2791_v37, %v2791_v37 }
 0x442   :  { %v1713_v52 = vrot.slane %v2793_v12, 4  ;;  %v1740_v30 = vmul.f32 %v2793_v12, %v2793_v12 }
 0x443   :  { %v1708_v53 = vadd.f32 %v1707_v51, %v2791_v37  ;;  %v1755_v36 = vrot.slane %v1739_v28, 4  ;;  %v1753_v51 = vrot.slane %v1752_v13, 1 }
 0x444   :  { %v1714_v19 = vadd.f32 %v1713_v52, %v2793_v12  ;;  %v1761_v35 = vrot.slane %v1740_v30, 4 }
 0x445   :  { %v1709_v3 = vrot.slane %v1708_v53, 2  ;;  %v1756_v5 = vadd.f32 %v1755_v36, %v1739_v28 }
 0x446   :  { %v1762_v40 = vadd.f32 %v1761_v35, %v1740_v30  ;;  %v1715_v17 = vrot.slane %v1714_v19, 2 }
 0x447   :  { %v1710_v38 = vadd.f32 %v1709_v3, %v1708_v53  ;;  %v1757_v16 = vrot.slane %v1756_v5, 2 }
 0x448   :  { %v1763_v45 = vrot.slane %v1762_v40, 2  ;;  %v1716_v49 = vadd.f32 %v1715_v17, %v1714_v19 }
 0x449   :  { %v1711_v46 = vrot.slane %v1710_v38, 1  ;;  %v1758_v29 = vadd.f32 %v1757_v16, %v1756_v5  ;;  %v1754_v5 = vadd.f32 %v1753_v51, %v1752_v13 }
 0x44a   :  { %v1688_v24 = vpop.f32.mrb[4].mxu1  ;;  %v1764_v0 = vadd.f32 %v1763_v45, %v1762_v40  ;;  %v1717_v23 = vrot.slane %v1716_v49, 1 }
 0x44b   :  { %v2806_v58 = vadd.f32 %v1688_v24, %v1475_v4  ;;  %v1690_v62 = vpop.f32.mrb[5].mxu1  ;;  %v1712_v15 = vadd.f32 %v1711_v46, %v1710_v38  ;;  %v1759_v36 = vrot.slane %v1758_v29, 1  ;;  %v1779_v46 = vmul.f32 %v1748_v34, %v2379_v21 }
 0x44c   :  { %v2809_v27 = vadd.f32 %v1690_v62, %v1475_v4  ;;  %v1765_v11 = vrot.slane %v1764_v0, 1  ;;  %v1718_v53 = vadd.f32 %v1717_v23, %v1716_v49  ;;  %v1780_v49 = vmul.f32 %v1754_v5, %v2383_v48 }
 0x44d   :  { %v1719_v8 = vrot.slane %v2806_v58, 4  ;;  %v1741_v10 = vmul.f32 %v2806_v58, %v2806_v58  ;;  %v1733_v1 = vmul.f32 %v1712_v15, %v2386_v55  ;;  %v1760_v44 = vadd.f32 %v1759_v36, %v1758_v29 }
 0x44e   :  { %v1725_v42 = vrot.slane %v2809_v27, 4  ;;  %v1742_v39 = vmul.f32 %v2809_v27, %v2809_v27  ;;  %v1766_v3 = vadd.f32 %v1765_v11, %v1764_v0  ;;  %v1734_v17 = vmul.f32 %v1718_v53, %v2425_v57 }
 0x44f   :  { %v1720_v22 = vadd.f32 %v1719_v8, %v2806_v58  ;;  %v1767_v4 = vrot.slane %v1741_v10, 4  ;;  %v1788_v43 = vsel %vm2900_vm12, %v1733_v1, 0.0  ;;  %v1781_v0 = vmul.f32 %v1760_v44, %v2386_v55 }
 0x450   :  { %v1726_v26 = vadd.f32 %v1725_v42, %v2809_v27  ;;  %v1773_v56 = vrot.slane %v1742_v39, 4  ;;  %v1789_v50 = vadd.f32 %v1788_v43, %v1787_v33  ;;  %v1782_v47 = vmul.f32 %v1766_v3, %v2425_v57 }
 0x451   :  { %v1721_v7 = vrot.slane %v1720_v22, 2  ;;  %v1768_v61 = vadd.f32 %v1767_v4, %v1741_v10  ;;  %v1792_v54 = vsel %vm2901_vm14, %v1734_v17, 0.0  ;;  %v1801_v1 = vsel %vm2906_vm1, %v1779_v46, 0.0  ;;  %v1693_v4 = vld [vmem:[%s2882_s7] sm:$0xff] }
 0x452   :  { %v1727_v28 = vrot.slane %v1726_v26, 2  ;;  %v1774_v52 = vadd.f32 %v1773_v56, %v1742_v39  ;;  %1790 = vadd.xlane.f32.xlu1 %v1789_v50  ;;  %v1808_v57 = vsel %vm2904_vm15, %v1782_v47, 0.0  ;;  %v1802_v42 = vsel %vm2907_vm4, %v1780_v49, 0.0 }
 0x453   :  { %v1722_v30 = vadd.f32 %v1721_v7, %v1720_v22  ;;  %v1769_v20 = vrot.slane %v1768_v61, 2  ;;  %v1803_v23 = vadd.f32 %v1802_v42, %v1801_v1 }
 0x454   :  { %v1728_v31 = vadd.f32 %v1727_v28, %v1726_v26  ;;  %v1775_v32 = vrot.slane %v1774_v52, 2 }
 0x455   :  { %v1723_v19 = vrot.slane %v1722_v30, 1  ;;  %v1770_v35 = vadd.f32 %v1769_v20, %v1768_v61 }
 0x456   :  { %v1729_v40 = vrot.slane %v1728_v31, 1  ;;  %v1776_v41 = vadd.f32 %v1775_v32, %v1774_v52 }
 0x457   :  { %v1724_v38 = vadd.f32 %v1723_v19, %v1722_v30  ;;  %v1771_v18 = vrot.slane %v1770_v35, 1 }
 0x458   :  { %v1730_v60 = vadd.f32 %v1729_v40, %v1728_v31  ;;  %v1777_v45 = vrot.slane %v1776_v41, 1 }
 0x459   :  { %v1735_v16 = vmul.f32 %v1724_v38, %v2428_v2  ;;  %v1772_v24 = vadd.f32 %v1771_v18, %v1770_v35 }
 0x45a   :  { %v1736_v62 = vmul.f32 %v1730_v60, %v2431_v9  ;;  %v1778_v15 = vadd.f32 %v1777_v45, %v1776_v41 }
 0x45b   :  { %v1793_v14 = vsel %vm2902_vm6, %v1735_v16, 0.0  ;;  %v1783_v13 = vmul.f32 %v1772_v24, %v2428_v2  ;;  %v1804_v2 = vsel %vm2909_vm7, %v1781_v0, 0.0 }
 0x45c   :  { %v1794_v8 = vadd.f32 %v1793_v14, %v1792_v54  ;;  %v1795_v21 = vsel %vm2903_vm13, %v1736_v62, 0.0  ;;  %v1784_v10 = vmul.f32 %v1778_v15, %v2431_v9  ;;  %v1805_v22 = vadd.f32 %v1804_v2, %v1803_v23  ;;  %v1694_v9 = vld [vmem:[%s2881_s8] sm:$0xff] }
 0x45d   :  { %v1809_v48 = vsel %vm2905_vm0, %v1783_v13, 0.0 }
 0x45e   :  { %v1796_v39 = vadd.f32 %v1795_v21, %v1794_v8  ;;  %v1810_v33 = vadd.f32 %v1809_v48, %v1808_v57  ;;  %v1811_v29 = vsel %vm2908_vm3, %v1784_v10, 0.0 }
 0x460   :  { %1797 = vadd.xlane.f32.xlu0 %v1796_v39  ;;  %v1812_v55 = vadd.f32 %v1811_v29, %v1810_v33 }
 0x462   :  { %1813 = vadd.xlane.f32.xlu1 %v1812_v55 }
 0x464   :  { %1806 = vadd.xlane.f32.xlu0 %v1805_v22 }
 0x473   :  { %1868 = vperm.xlu1 %2001, %v1694_v9  }
 0x47a   :  { %1857 = vperm.xlu0 %2000, %v1693_v4  }
 0x4df   :  { %v1791_v43 = vpop.xlane.xlu1 %1790 }
 0x4e0   :  { %v1799_v50 = vmul.f32 0.00048828125, %v1791_v43 }
 0x4e2   :  { %v1817_v28 = vmul.f32 %v1799_v50, %v1799_v50  ;;  %v1830_v19 = vrot.slane %v1799_v50, %v2365_v25 }
 0x4e4   :  { %v1835_v44 = vsub.f32 %v2779_v6, %v1830_v19  ;;  %v1836_v60 = vsub.f32 %v2781_v59, %v1830_v19  ;;  %v1837_v45 = vsub.f32 %v2791_v37, %v1830_v19 }
 0x4ed   :  { %v1798_v26 = vpop.xlane.xlu0 %1797 }
 0x4ee   :  { %v1800_v56 = vmul.f32 0.00048828125, %v1798_v26 }
 0x4ef   :  { %v1814_v63 = vpop.xlane.xlu1 %1813 }
 0x4f0   :  { %v1818_v7 = vmul.f32 %v1800_v56, %v1800_v56  ;;  %v1816_v61 = vmul.f32 0.00048828125, %v1814_v63  ;;  %v1834_v32 = vrot.slane %v1800_v56, %v2365_v25 }
 0x4f1   :  { %v1807_v11 = vpop.xlane.xlu0 %1806 }
 0x4f2   :  { %v1820_v51 = vsub.f32 %v1816_v61, %v1818_v7  ;;  %v1815_v52 = vmul.f32 0.00048828125, %v1807_v11  ;;  %v1838_v35 = vsub.f32 %v2793_v12, %v1834_v32  ;;  %v1839_v3 = vsub.f32 %v2806_v58, %v1834_v32 }
 0x4f3   :  { %v1840_v5 = vsub.f32 %v2809_v27, %v1834_v32  ;;  %v1869_v47 = vpop.permute.xlu1 %1868 }
 0x4f4   :  { %v1822_v30 = vmax.f32 %v1820_v51, 0.0  ;;  %v1819_v20 = vsub.f32 %v1815_v52, %v1817_v28 }
 0x4f6   :  { %v1824_v53 = vadd.f32 1e-05, %v1822_v30  ;;  %v1821_v36 = vmax.f32 %v1819_v20, 0.0 }
 0x4f8   :  { %2030 = vrsqrt.f32 %v1824_v53  ;;  %v1823_v31 = vadd.f32 1e-05, %v1821_v36 }
 0x4f9   :  { %v1858_v46 = vpop.permute.xlu0 %1857 }
 0x4fa   :  { %2032 = vrsqrt.f32 %v1823_v31 }
 0x502   :  { %v2031_v34 = vpop.eup %2030 }
 0x503   :  { %v1848_v40 = vrot.slane %v2031_v34, %v2365_v25 }
 0x504   :  { %v2033_v41 = vpop.eup %2032 }
 0x505   :  { %v1852_v38 = vmul.f32 %v1848_v40, %v1838_v35  ;;  %v1853_v17 = vmul.f32 %v1848_v40, %v1839_v3  ;;  %v1854_v18 = vmul.f32 %v1848_v40, %v1840_v5  ;;  %v1844_v16 = vrot.slane %v2033_v41, %v2365_v25 }
 0x507   :  { %v1863_v12 = vmul.f32 %v1858_v46, %v1852_v38  ;;  %v1864_v24 = vmul.f32 %v1858_v46, %v1853_v17  ;;  %v1865_v58 = vmul.f32 %v1858_v46, %v1854_v18  ;;  %v1849_v27 = vmul.f32 %v1844_v16, %v1835_v44 }
 0x508   :  { %v1850_v49 = vmul.f32 %v1844_v16, %v1836_v60  ;;  %v1851_v62 = vmul.f32 %v1844_v16, %v1837_v45 }
 0x509   :  { %v1874_v15 = vadd.f32 %v1869_v47, %v1863_v12  ;;  %v1875_v54 = vadd.f32 %v1869_v47, %v1864_v24  ;;  %v1876_v14 = vadd.f32 %v1869_v47, %v1865_v58  ;;  %v1860_v13 = vmul.f32 %v1858_v46, %v1849_v27 }
 0x50a   :  { %v1861_v0 = vmul.f32 %v1858_v46, %v1850_v49  ;;  %v1862_v6 = vmul.f32 %v1858_v46, %v1851_v62 }
 0x50b   :  { %1880 = vst [vmem:[%s2883_s10 + $0x18] sm:$0xff] %v1874_v15  ;;  %1881 = vst [vmem:[%s2883_s10 + $0x20] sm:$0xff] %v1875_v54  ;;  %v1871_v25 = vadd.f32 %v1869_v47, %v1860_v13 }
 0x50c   :  { %1882 = vst [vmem:[%s2883_s10 + $0x28] sm:$0xff] %v1876_v14  ;;  %v1872_v59 = vadd.f32 %v1869_v47, %v1861_v0  ;;  %v1873_v37 = vadd.f32 %v1869_v47, %v1862_v6 }
 0x50d   :  { %1877 = vst [vmem:[%s2883_s10] sm:$0xff] %v1871_v25 }
 0x50e   :  { %1878 = vst [vmem:[%s2883_s10 + $0x8] sm:$0xff] %v1872_v59  ;;  %1879 = vst [vmem:[%s2883_s10 + $0x10] sm:$0xff] %v1873_v37 }

</bundles_post_ra>
